<compile_context>
chip_gen: v7x
topology: tpu7x:2x2x1
jax: 0.10.0
libtpu: 0.0.40
codegen_flags: <defaults>
</compile_context>

<pallas_src>
import jax
import jax.numpy as jnp
from jax.experimental import pallas as pl
from jax.experimental.pallas import tpu as pltpu


_ROW_QUANTUM = 8                  # f32 sublane tile height
_MIN_EFF_TILE = 512               # rows; >=512-row tiles reach ~85% HBM roofline
_DEFAULT_TILE_N = 2048


def _round_up(a, m):
    return ((a + m - 1) // m) * m


def _round_down(a, m):
    return (a // m) * m


def _vmem_capacity_bytes():
    """Physical VMEM of the local chip; conservative (v7x, 64 MiB) fallback."""
    try:
        cap = getattr(pltpu.get_tpu_info(), "vmem_capacity_bytes", None)
        if cap:
            return int(cap)
    except Exception:
        pass
    return 64 * 1024 * 1024


def _mlp_kernel(x_ref, w1_ref, b1_ref, w2_ref, b2_ref, w3_ref, b3_ref, o_ref):
    # Layer 1: Linear(dim, 128). x tile arrives f32 (no wrapper cast pass);
    # cast to bf16 here, accumulate in f32 on the MXU, then ReLU.
    x = x_ref[...].astype(jnp.bfloat16)
    h1 = jnp.dot(x, w1_ref[...], preferred_element_type=jnp.float32)
    h1 = jnp.maximum(h1 + b1_ref[...], 0.0)
    # Layer 2: Linear(128, 32) with BatchNorm1d(128) pre-folded -> ReLU.
    h2 = jnp.dot(h1.astype(jnp.bfloat16), w2_ref[...],
                 preferred_element_type=jnp.float32)
    h2 = jnp.maximum(h2 + b2_ref[...], 0.0)
    # Layer 3: Linear(32, C) with BatchNorm1d(32) pre-folded.
    out = jnp.dot(h2.astype(jnp.bfloat16), w3_ref[...],
                  preferred_element_type=jnp.float32)
    o_ref[...] = (out + b3_ref[...]).astype(o_ref.dtype)


def pixel_classifier_forward(x, params, *, tile_n=_DEFAULT_TILE_N,
                             out_dtype=jnp.float32):
    """Eval-mode forward. x: [N, dim] float32 -> [N, numpy_class] out_dtype."""
    N, dim = x.shape
    w1, b1 = params["w1"], params["b1"]
    w2, b2 = params["w2"], params["b2"]
    w3, b3 = params["w3"], params["b3"]
    s1, t1 = params["s1"], params["t1"]
    s2, t2 = params["s2"], params["t2"]
    H1, H2, C = w1.shape[1], w2.shape[1], w3.shape[1]

    # ---- Fold eval-mode BN affines into the following Linears (exact) and
    #      pre-cast the tiny, grid-constant weights to bf16 for the MXU.
    w1_bf = w1.astype(jnp.bfloat16)
    w2_bf = (s1.reshape(H1, 1) * w2).astype(jnp.bfloat16)
    b2f = (t1 @ w2 + b2).astype(jnp.float32)
    w3_bf = (s2.reshape(H2, 1) * w3).astype(jnp.bfloat16)
    b3f = (t2 @ w3 + b3).astype(jnp.float32)
    b1f = b1.astype(jnp.float32)

    # ---- Generation-aware VMEM budget with honest per-tile accounting.
    cap = _vmem_capacity_bytes()
    budget = int(cap * 0.70)              # headroom for compiler temps
    weight_vmem = 2 * (w1_bf.size * 2 + b1f.size * 4 + w2_bf.size * 2
                       + b2f.size * 4 + w3_bf.size * 2 + b3f.size * 4)
    row_bytes = (2 * dim * 4              # double-buffered f32 x tile
                 + 2 * C * 4              # double-buffered f32 out tile
                 + dim * 2                # in-kernel bf16 copy of x
                 + H1 * (4 + 2)           # h1 f32 result + bf16 cast
                 + H2 * (4 + 2))          # h2 f32 result + bf16 cast
    slack = 4 * 1024 * 1024
    vmem_tile_cap = _round_down(
        max(_ROW_QUANTUM, (budget - weight_vmem - slack) // row_bytes),
        _ROW_QUANTUM)

    # ---- Batch tile: as large as the budget allows; no forced split for
    #      small N; >= 4 grid steps when N is large (>= 2 steps per v7x core,
    #      and better prefetch/writeback overlap on single-core chips too).
    tile_n = max(_ROW_QUANTUM,
                 min(tile_n, vmem_tile_cap, _round_up(N, _ROW_QUANTUM)))
    if N >= 4 * _MIN_EFF_TILE:
        tile_n = min(tile_n,
                     max(_MIN_EFF_TILE,
                         _round_up(pl.cdiv(N, 4), _ROW_QUANTUM)))
    grid_n = pl.cdiv(N, tile_n)           # partial last tile: OOB reads are
                                          # memory-safe, OOB writes are masked.

    vmem_limit = int(min(max(32 * 1024 * 1024,
                             weight_vmem + tile_n * row_bytes + (8 << 20)),
                         int(cap * 0.9)))

    def const_spec(shape):
        # Constant index map: same block every grid step (not re-DMAed).
        return pl.BlockSpec(shape, lambda i: (0,) * len(shape))

    return pl.pallas_call(
        _mlp_kernel,
        out_shape=jax.ShapeDtypeStruct((N, C), out_dtype),
        grid_spec=pltpu.PrefetchScalarGridSpec(
            num_scalar_prefetch=0,
            grid=(grid_n,),
            in_specs=[
                pl.BlockSpec((tile_n, dim), lambda i: (i, 0)),   # x tile (f32)
                const_spec((dim, H1)), const_spec((1, H1)),
                const_spec((H1, H2)), const_spec((1, H2)),
                const_spec((H2, C)), const_spec((1, C)),
            ],
            # Unpadded (tile_n, C) output block: far fewer HBM write bytes than
            # a 128-lane-padded slab, and no wrapper slice copy afterwards.
            out_specs=pl.BlockSpec((tile_n, C), lambda i: (i, 0)),
        ),
        compiler_params=pltpu.CompilerParams(
            dimension_semantics=("parallel",),
            vmem_limit_bytes=vmem_limit),
    )(x, w1_bf, b1f, w2_bf, b2f, w3_bf, b3f)


def make_params(key, dim, numpy_class, gain=0.02, eps=1e-5):
    """Mirrors pixel_classifier.init_weights('normal'): Linear weight ~ N(0, gain),
    bias = 0.  BatchNorm1d running stats / affine are given non-trivial values
    (as after some training) so the BN-folding is actually exercised."""
    assert numpy_class < 32, "demo uses the numpy_class < 32 branch"
    H1, H2 = 128, 32
    k1, k2, k3, k4, k5 = jax.random.split(key, 5)

    def bn_affine(k, n):
        kg, kb, km, kv = jax.random.split(k, 4)
        gamma = 1.0 + 0.1 * jax.random.normal(kg, (1, n), jnp.float32)
        beta = 0.1 * jax.random.normal(kb, (1, n), jnp.float32)
        running_mean = 0.1 * jax.random.normal(km, (1, n), jnp.float32)
        running_var = 0.5 + jax.random.uniform(kv, (1, n), jnp.float32)
        scale = gamma / jnp.sqrt(running_var + eps)
        shift = beta - running_mean * scale
        return scale, shift

    s1, t1 = bn_affine(k4, H1)
    s2, t2 = bn_affine(k5, H2)

    return {
        # PyTorch Linear stores weight as [out, in]; we store [in, out] so the
        # kernel does x @ W directly (mathematically identical).
        "w1": gain * jax.random.normal(k1, (dim, H1), jnp.float32),
        "b1": jnp.zeros((1, H1), jnp.float32),
        "s1": s1, "t1": t1,
        "w2": gain * jax.random.normal(k2, (H1, H2), jnp.float32),
        "b2": jnp.zeros((1, H2), jnp.float32),
        "s2": s2, "t2": t2,
        "w3": gain * jax.random.normal(k3, (H2, numpy_class), jnp.float32),
        "b3": jnp.zeros((1, numpy_class), jnp.float32),
    }


def reference_forward(x, params):
    """Pure-JAX f32 reference of the same eval-mode forward (unfolded BN)."""
    h1 = jnp.maximum(x @ params["w1"] + params["b1"], 0.0)
    h1 = h1 * params["s1"] + params["t1"]
    h2 = jnp.maximum(h1 @ params["w2"] + params["b2"], 0.0)
    h2 = h2 * params["s2"] + params["t2"]
    return h2 @ params["w3"] + params["b3"]


if __name__ == "__main__":
    key = jax.random.PRNGKey(0)
    k_param, k_x = jax.random.split(key)

    dim = 32            # feature dim per pixel
    numpy_class = 10    # < 32 -> 128/32 hidden branch
    N = 500             # pixels; deliberately NOT a tile multiple (partial tile)

    params = make_params(k_param, dim, numpy_class)
    x = jax.random.normal(k_x, (N, dim), jnp.float32)

    out = jax.block_until_ready(pixel_classifier_forward(x, params))
    ref = reference_forward(x, params)

    assert out.shape == (N, numpy_class), out.shape
    # All matmuls use bf16 operands (f32 accumulation), so the tolerance is
    # loosened relative to the pure-f32 reference.
    assert jnp.allclose(out, ref, atol=2e-3, rtol=2e-2), (
        float(jnp.max(jnp.abs(out - ref))))

    print("KERNEL_OK")
</pallas_src>

<mosaic_0001>
module attributes {stable_mosaic.version = 11 : i64} {
  func.func @_mlp_kernel(%arg0: i32, %arg1: memref<504x32xf32, #tpu.memory_space<vmem>>, %arg2: memref<32x128xbf16, #tpu.memory_space<vmem>>, %arg3: memref<1x128xf32, #tpu.memory_space<vmem>>, %arg4: memref<128x32xbf16, #tpu.memory_space<vmem>>, %arg5: memref<1x32xf32, #tpu.memory_space<vmem>>, %arg6: memref<32x10xbf16, #tpu.memory_space<vmem>>, %arg7: memref<1x10xf32, #tpu.memory_space<vmem>>, %arg8: memref<504x10xf32, #tpu.memory_space<vmem>>) attributes {dimension_semantics = [#tpu.dimension_semantics<parallel>], iteration_bounds = array<i64: 1>, scalar_prefetch = 0 : i64, scratch_operands = 0 : i64, tpu.core_type = #tpu.core_type<tc>, window_params = [{transform_indices = @transform_0, window_bounds = array<i64: 504, 32>}, {pipeline_mode = #tpu.pipeline_mode<synchronous>, transform_indices = @transform_1, window_bounds = array<i64: 32, 128>}, {pipeline_mode = #tpu.pipeline_mode<synchronous>, transform_indices = @transform_2, window_bounds = array<i64: 1, 128>}, {pipeline_mode = #tpu.pipeline_mode<synchronous>, transform_indices = @transform_3, window_bounds = array<i64: 128, 32>}, {pipeline_mode = #tpu.pipeline_mode<synchronous>, transform_indices = @transform_4, window_bounds = array<i64: 1, 32>}, {pipeline_mode = #tpu.pipeline_mode<synchronous>, transform_indices = @transform_5, window_bounds = array<i64: 32, 10>}, {pipeline_mode = #tpu.pipeline_mode<synchronous>, transform_indices = @transform_6, window_bounds = array<i64: 1, 10>}, {transform_indices = @transform_7, window_bounds = array<i64: 504, 10>}]} {
    %c0 = arith.constant 0 : index
    %c0_0 = arith.constant 0 : index
    %0 = vector.load %arg1[%c0, %c0_0] : memref<504x32xf32, #tpu.memory_space<vmem>>, vector<504x32xf32>
    %1 = arith.truncf %0 : vector<504x32xf32> to vector<504x32xbf16>
    %c0_1 = arith.constant 0 : index
    %c0_2 = arith.constant 0 : index
    %2 = vector.load %arg2[%c0_1, %c0_2] : memref<32x128xbf16, #tpu.memory_space<vmem>>, vector<32x128xbf16>
    %cst = arith.constant dense<0.000000e+00> : vector<504x128xf32>
    %3 = tpu.matmul %1, %2, %cst {dimension_numbers = #tpu.dot_dimension_numbers<[1], [0], [0], [1], [0, 0, 1, 1], [], []>} : vector<504x32xbf16>, vector<32x128xbf16>, vector<504x128xf32> -> vector<504x128xf32>
    %c0_3 = arith.constant 0 : index
    %c0_4 = arith.constant 0 : index
    %4 = vector.load %arg3[%c0_3, %c0_4] : memref<1x128xf32, #tpu.memory_space<vmem>>, vector<1x128xf32>
    %5 = vector.broadcast %4 : vector<1x128xf32> to vector<504x128xf32>
    %6 = arith.addf %3, %5 : vector<504x128xf32>
    %cst_5 = arith.constant 0.000000e+00 : f32
    %7 = vector.broadcast %cst_5 : f32 to vector<504x128xf32>
    %8 = arith.maximumf %6, %7 : vector<504x128xf32>
    %9 = arith.truncf %8 : vector<504x128xf32> to vector<504x128xbf16>
    %c0_6 = arith.constant 0 : index
    %c0_7 = arith.constant 0 : index
    %10 = vector.load %arg4[%c0_6, %c0_7] : memref<128x32xbf16, #tpu.memory_space<vmem>>, vector<128x32xbf16>
    %cst_8 = arith.constant dense<0.000000e+00> : vector<504x32xf32>
    %11 = tpu.matmul %9, %10, %cst_8 {dimension_numbers = #tpu.dot_dimension_numbers<[1], [0], [0], [1], [0, 0, 1, 1], [], []>} : vector<504x128xbf16>, vector<128x32xbf16>, vector<504x32xf32> -> vector<504x32xf32>
    %c0_9 = arith.constant 0 : index
    %c0_10 = arith.constant 0 : index
    %12 = vector.load %arg5[%c0_9, %c0_10] : memref<1x32xf32, #tpu.memory_space<vmem>>, vector<1x32xf32>
    %13 = vector.broadcast %12 : vector<1x32xf32> to vector<504x32xf32>
    %14 = arith.addf %11, %13 : vector<504x32xf32>
    %cst_11 = arith.constant 0.000000e+00 : f32
    %15 = vector.broadcast %cst_11 : f32 to vector<504x32xf32>
    %16 = arith.maximumf %14, %15 : vector<504x32xf32>
    %17 = arith.truncf %16 : vector<504x32xf32> to vector<504x32xbf16>
    %c0_12 = arith.constant 0 : index
    %c0_13 = arith.constant 0 : index
    %18 = vector.load %arg6[%c0_12, %c0_13] : memref<32x10xbf16, #tpu.memory_space<vmem>>, vector<32x10xbf16>
    %cst_14 = arith.constant dense<0.000000e+00> : vector<504x10xf32>
    %19 = tpu.matmul %17, %18, %cst_14 {dimension_numbers = #tpu.dot_dimension_numbers<[1], [0], [0], [1], [0, 0, 1, 1], [], []>} : vector<504x32xbf16>, vector<32x10xbf16>, vector<504x10xf32> -> vector<504x10xf32>
    %c0_15 = arith.constant 0 : index
    %c0_16 = arith.constant 0 : index
    %20 = vector.load %arg7[%c0_15, %c0_16] : memref<1x10xf32, #tpu.memory_space<vmem>>, vector<1x10xf32>
    %21 = vector.broadcast %20 : vector<1x10xf32> to vector<504x10xf32>
    %22 = arith.addf %19, %21 : vector<504x10xf32>
    %c0_17 = arith.constant 0 : index
    %c0_18 = arith.constant 0 : index
    %23 = vector.load %arg8[%c0_17, %c0_18] : memref<504x10xf32, #tpu.memory_space<vmem>>, vector<504x10xf32>
    tpu.vector_store %arg8[%c0_17, %c0_18], %22 {strides = array<i32>} : memref<504x10xf32, #tpu.memory_space<vmem>>, vector<504x10xf32>,
    return
  }
  func.func @transform_0(%arg0: i32) -> (i32, i32) {
    %c0_i32 = arith.constant 0 : i32
    %c0_i32_0 = arith.constant 0 : i32
    return %arg0, %c0_i32 : i32, i32
  }
  func.func @transform_1(%arg0: i32) -> (i32, i32) {
    %c0_i32 = arith.constant 0 : i32
    %c0_i32_0 = arith.constant 0 : i32
    %c0_i32_1 = arith.constant 0 : i32
    return %c0_i32, %c0_i32_0 : i32, i32
  }
  func.func @transform_2(%arg0: i32) -> (i32, i32) {
    %c0_i32 = arith.constant 0 : i32
    %c0_i32_0 = arith.constant 0 : i32
    %c0_i32_1 = arith.constant 0 : i32
    return %c0_i32, %c0_i32_0 : i32, i32
  }
  func.func @transform_3(%arg0: i32) -> (i32, i32) {
    %c0_i32 = arith.constant 0 : i32
    %c0_i32_0 = arith.constant 0 : i32
    %c0_i32_1 = arith.constant 0 : i32
    return %c0_i32, %c0_i32_0 : i32, i32
  }
  func.func @transform_4(%arg0: i32) -> (i32, i32) {
    %c0_i32 = arith.constant 0 : i32
    %c0_i32_0 = arith.constant 0 : i32
    %c0_i32_1 = arith.constant 0 : i32
    return %c0_i32, %c0_i32_0 : i32, i32
  }
  func.func @transform_5(%arg0: i32) -> (i32, i32) {
    %c0_i32 = arith.constant 0 : i32
    %c0_i32_0 = arith.constant 0 : i32
    %c0_i32_1 = arith.constant 0 : i32
    return %c0_i32, %c0_i32_0 : i32, i32
  }
  func.func @transform_6(%arg0: i32) -> (i32, i32) {
    %c0_i32 = arith.constant 0 : i32
    %c0_i32_0 = arith.constant 0 : i32
    %c0_i32_1 = arith.constant 0 : i32
    return %c0_i32, %c0_i32_0 : i32, i32
  }
  func.func @transform_7(%arg0: i32) -> (i32, i32) {
    %c0_i32 = arith.constant 0 : i32
    %c0_i32_0 = arith.constant 0 : i32
    return %arg0, %c0_i32 : i32, i32
  }
}

</mosaic_0001>

<bundles_post_ra>
// kernel: tpu_custom_call.1
= control target key start
LH: loop header
LB: loop body
LE: loop exit
PB: predicated region body
PF: predicated region fallthrough
CT: control target
= control target key end

     0   :  { %vm145_vm0 = vcmask 261120   ;;  %vm1486_vm1 = vcmask 80896   ;;  %s2788_s1 = inlined_call_operand.vmem [shape: bf16[32,128], index: 1, kind: input, shape index: {}]   ;;  %s2789_s0 = inlined_call_operand.vmem [shape: f32[500,32], index: 0, kind: input, shape index: {}]   ;;  %s2790_s3 = inlined_call_operand.vmem [shape: bf16[128,32], index: 3, kind: input, shape index: {}]   ;;  %s2791_s2 = inlined_call_operand.vmem [shape: f32[1,128], index: 2, kind: input, shape index: {}]   ;;  %s2792_s5 = inlined_call_operand.vmem [shape: bf16[32,10], index: 5, kind: input, shape index: {}]   ;;  %s2793_s4 = inlined_call_operand.vmem [shape: f32[1,32], index: 4, kind: input, shape index: {}]   ;;  %s2794_s6 = inlined_call_operand.vmem [shape: f32[1,10], index: 6, kind: input, shape index: {}]   ;;  %s2795_s7 = inlined_call_operand.vmem [shape: f32[500,10], index: 7, kind: output, shape index: {}]  }
   0x1   :  { %v1961_v0 = vld [vmem:[%s2788_s1] sm:$0xff]   ;;  %v1962_v1 = vld [vmem:[%s2788_s1 + $0x8] sm:$0xff]   ;;  %v29_v5 = vld [vmem:[%s2789_s0 + $0x10] sm:$0xff] }
   0x2   :  { %1741 = vmatprep.subr.bf16.mxu0 %v1961_v0  ;;  %v27_v2 = vld [vmem:[%s2789_s0] sm:$0xff]  ;;  %v28_v3 = vld [vmem:[%s2789_s0 + $0x8] sm:$0xff]  ;;  %1957 = vmatprep.subr.bf16.mxu1 %v1961_v0  ;;  %v30_v6 = vld [vmem:[%s2789_s0 + $0x18] sm:$0xff] }
   0x3   :  { %1742 = vmatpush3.bf16.msra.mxu0 %v1961_v0  ;;  %v90_v4 = vpack.c.bf16 %v28_v3, %v27_v2  ;;  %1959 = vmatpush3.bf16.msra.mxu1 %v1961_v0  ;;  %v31_v7 = vld [vmem:[%s2789_s0 + $0x20] sm:$0xff]  ;;  %v32_v8 = vld [vmem:[%s2789_s0 + $0x28] sm:$0xff]  ;;  %v91_v9 = vpack.c.bf16 %v30_v6, %v29_v5  ;;  %v33_v11 = vld [vmem:[%s2789_s0 + $0x30] sm:$0xff] }
   0x4   :  { %1743 = vmatprep.subr.bf16.mxu0 %v1962_v1  ;;  %1958 = vmatprep.subr.bf16.mxu1 %v1962_v1  ;;  %v92_v10 = vpack.c.bf16 %v32_v8, %v31_v7  ;;  %v34_v12 = vld [vmem:[%s2789_s0 + $0x38] sm:$0xff]  ;;  %v35_v13 = vld [vmem:[%s2789_s0 + $0x40] sm:$0xff]  ;;  %v36_v14 = vld [vmem:[%s2789_s0 + $0x48] sm:$0xff] }
   0x5   :  { %1745 = vmatprep.mubr.msk.bf16.mxu0 %vm145_vm0, %v90_v4  ;;  %v59_v15 = vld [vmem:[%s2789_s0 + $0x100] sm:$0xff]  ;;  %v60_v16 = vld [vmem:[%s2789_s0 + $0x108] sm:$0xff]  ;;  %v61_v17 = vld [vmem:[%s2789_s0 + $0x110] sm:$0xff]  ;;  %v93_v19 = vpack.c.bf16 %v34_v12, %v33_v11  ;;  %v94_v24 = vpack.c.bf16 %v36_v14, %v35_v13 }
   0x6   :  { %v62_v18 = vld [vmem:[%s2789_s0 + $0x118] sm:$0xff]  ;;  %v106_v20 = vpack.c.bf16 %v60_v16, %v59_v15  ;;  %v63_v22 = vld [vmem:[%s2789_s0 + $0x120] sm:$0xff]  ;;  %v64_v23 = vld [vmem:[%s2789_s0 + $0x128] sm:$0xff] }
   0x7   :  { %1744 = vmatpush3.bf16.msra.mxu0 %v1962_v1  ;;  %1960 = vmatpush3.bf16.msra.mxu1 %v1962_v1  ;;  %v107_v21 = vpack.c.bf16 %v62_v18, %v61_v17  ;;  %v108_v25 = vpack.c.bf16 %v64_v23, %v63_v22  ;;  %v37_v26 = vld [vmem:[%s2789_s0 + $0x50] sm:$0xff]  ;;  %v66_v28 = vld [vmem:[%s2789_s0 + $0x138] sm:$0xff]  ;;  %v67_v30 = vld [vmem:[%s2789_s0 + $0x140] sm:$0xff] }
   0x8   :  { %1777 = vmatprep.mubr.msk.bf16.mxu1 %vm145_vm0, %v106_v20  ;;  %v65_v27 = vld [vmem:[%s2789_s0 + $0x130] sm:$0xff]  ;;  %v38_v29 = vld [vmem:[%s2789_s0 + $0x58] sm:$0xff]  ;;  %v68_v31 = vld [vmem:[%s2789_s0 + $0x148] sm:$0xff] }
   0x9   :  { %v39_v32 = vld [vmem:[%s2789_s0 + $0x60] sm:$0xff]  ;;  %v40_v33 = vld [vmem:[%s2789_s0 + $0x68] sm:$0xff]  ;;  %v109_v34 = vpack.c.bf16 %v66_v28, %v65_v27  ;;  %v95_v35 = vpack.c.bf16 %v38_v29, %v37_v26  ;;  %v110_v36 = vpack.c.bf16 %v68_v31, %v67_v30  ;;  %v69_v39 = vld [vmem:[%s2789_s0 + $0x150] sm:$0xff] }
   0xa   :  { %1746 = vmatmul.mubr.msk.bf16.vlgmr.msra.gmra.mrb[0].mxu0 %vm145_vm0, %v91_v9  ;;  %1778 = vmatmul.mubr.msk.bf16.vlgmr.msra.gmra.mrb[0].mxu1 %vm145_vm0, %v107_v21  ;;  %v96_v37 = vpack.c.bf16 %v40_v33, %v39_v32  ;;  %v1963_v38 = vld [vmem:[%s2790_s3] sm:$0xff]   ;;  %v1964_v40 = vld [vmem:[%s2790_s3 + $0x8] sm:$0xff]   ;;  %v41_v41 = vld [vmem:[%s2789_s0 + $0x70] sm:$0xff] }
   0xb   :  { %1749 = vmatprep.mubr.msk.bf16.mxu0 %vm145_vm0, %v92_v10  ;;  %1781 = vmatprep.mubr.msk.bf16.mxu1 %vm145_vm0, %v108_v25  ;;  %v42_v42 = vld [vmem:[%s2789_s0 + $0x78] sm:$0xff]  ;;  %v43_v44 = vld [vmem:[%s2789_s0 + $0x80] sm:$0xff]  ;;  %v44_v45 = vld [vmem:[%s2789_s0 + $0x88] sm:$0xff] }
   0xc   :  { %v70_v43 = vld [vmem:[%s2789_s0 + $0x158] sm:$0xff]  ;;  %1809 = vmatprep.subr.bf16.mxu1 %v1963_v38  ;;  %v71_v46 = vld [vmem:[%s2789_s0 + $0x160] sm:$0xff]  ;;  %v72_v47 = vld [vmem:[%s2789_s0 + $0x168] sm:$0xff]  ;;  %v97_v50 = vpack.c.bf16 %v42_v42, %v41_v41  ;;  %v98_v52 = vpack.c.bf16 %v44_v45, %v43_v44 }
   0xd   :  { %1810 = vmatpush3.bf16.msra.mxu1 %v1963_v38  ;;  %v1965_v48 = vld [vmem:[%s2790_s3 + $0x10] sm:$0xff]   ;;  %v111_v49 = vpack.c.bf16 %v70_v43, %v69_v39  ;;  %v112_v51 = vpack.c.bf16 %v72_v47, %v71_v46  ;;  %v1966_v53 = vld [vmem:[%s2790_s3 + $0x18] sm:$0xff]   ;;  %v75_v58 = vld [vmem:[%s2789_s0 + $0x180] sm:$0xff] }
   0xe   :  { %1811 = vmatprep.subr.bf16.mxu1 %v1964_v40  ;;  %v45_v54 = vld [vmem:[%s2789_s0 + $0x90] sm:$0xff]  ;;  %v74_v56 = vld [vmem:[%s2789_s0 + $0x178] sm:$0xff]  ;;  %v76_v59 = vld [vmem:[%s2789_s0 + $0x188] sm:$0xff] }
   0xf   :  { %v73_v55 = vld [vmem:[%s2789_s0 + $0x170] sm:$0xff]  ;;  %v46_v57 = vld [vmem:[%s2789_s0 + $0x98] sm:$0xff]  ;;  %v47_v60 = vld [vmem:[%s2789_s0 + $0xa0] sm:$0xff]  ;;  %v114_v1 = vpack.c.bf16 %v76_v59, %v75_v58 }
  0x10   :  { %v48_v61 = vld [vmem:[%s2789_s0 + $0xa8] sm:$0xff]  ;;  %v1967_v62 = vld [vmem:[%s2790_s3 + $0x20] sm:$0xff]   ;;  %v113_v63 = vpack.c.bf16 %v74_v56, %v73_v55  ;;  %v99_v0 = vpack.c.bf16 %v46_v57, %v45_v54  ;;  %v49_v4 = vld [vmem:[%s2789_s0 + $0xb0] sm:$0xff] }
  0x11   :  { %1812 = vmatpush3.bf16.msra.mxu1 %v1964_v40  ;;  %v100_v2 = vpack.c.bf16 %v48_v61, %v47_v60  ;;  %v1968_v3 = vld [vmem:[%s2790_s3 + $0x28] sm:$0xff]   ;;  %v77_v5 = vld [vmem:[%s2789_s0 + $0x190] sm:$0xff]  ;;  %v78_v6 = vld [vmem:[%s2789_s0 + $0x198] sm:$0xff] }
  0x12   :  { %1750 = vmatmul.mubr.msk.bf16.gmra.mrb[4].mxu0 %vm145_vm0, %v93_v19  ;;  %1782 = vmatmul.mubr.msk.bf16.gmra.mrb[4].mxu1 %vm145_vm0, %v109_v34  ;;  %v50_v7 = vld [vmem:[%s2789_s0 + $0xb8] sm:$0xff]  ;;  %v79_v8 = vld [vmem:[%s2789_s0 + $0x1a0] sm:$0xff]  ;;  %v80_v9 = vld [vmem:[%s2789_s0 + $0x1a8] sm:$0xff]  ;;  %v115_v13 = vpack.c.bf16 %v78_v6, %v77_v5 }
  0x13   :  { %1753 = vmatprep.mubr.msk.bf16.mxu0 %vm145_vm0, %v94_v24  ;;  %1785 = vmatprep.mubr.msk.bf16.mxu1 %vm145_vm0, %v110_v36  ;;  %v51_v10 = vld [vmem:[%s2789_s0 + $0xc0] sm:$0xff]  ;;  %v52_v11 = vld [vmem:[%s2789_s0 + $0xc8] sm:$0xff]  ;;  %v1969_v12 = vld [vmem:[%s2790_s3 + $0x30] sm:$0xff]   ;;  %v101_v14 = vpack.c.bf16 %v50_v7, %v49_v4  ;;  %v116_v15 = vpack.c.bf16 %v80_v9, %v79_v8 }
  0x14   :  { %1813 = vmatprep.subr.bf16.mxu1 %v1965_v48  ;;  %v102_v16 = vpack.c.bf16 %v52_v11, %v51_v10  ;;  %v53_v17 = vld [vmem:[%s2789_s0 + $0xd0] sm:$0xff]  ;;  %v82_v19 = vld [vmem:[%s2789_s0 + $0x1b8] sm:$0xff]  ;;  %v83_v21 = vld [vmem:[%s2789_s0 + $0x1c0] sm:$0xff] }
  0x15   :  { %1814 = vmatpush3.bf16.msra.mxu1 %v1965_v48  ;;  %v81_v18 = vld [vmem:[%s2789_s0 + $0x1b0] sm:$0xff]  ;;  %v54_v20 = vld [vmem:[%s2789_s0 + $0xd8] sm:$0xff]  ;;  %v84_v22 = vld [vmem:[%s2789_s0 + $0x1c8] sm:$0xff] }
  0x16   :  { %1815 = vmatprep.subr.bf16.mxu1 %v1966_v53  ;;  %v55_v23 = vld [vmem:[%s2789_s0 + $0xe0] sm:$0xff]  ;;  %v56_v24 = vld [vmem:[%s2789_s0 + $0xe8] sm:$0xff]  ;;  %v117_v25 = vpack.c.bf16 %v82_v19, %v81_v18  ;;  %v103_v26 = vpack.c.bf16 %v54_v20, %v53_v17  ;;  %v118_v27 = vpack.c.bf16 %v84_v22, %v83_v21  ;;  %v57_v29 = vld [vmem:[%s2789_s0 + $0xf0] sm:$0xff] }
  0x17   :  { %v104_v28 = vpack.c.bf16 %v56_v24, %v55_v23  ;;  %v85_v30 = vld [vmem:[%s2789_s0 + $0x1d0] sm:$0xff]  ;;  %v86_v31 = vld [vmem:[%s2789_s0 + $0x1d8] sm:$0xff]  ;;  %v87_v33 = vld [vmem:[%s2789_s0 + $0x1e0] sm:$0xff] }
  0x18   :  { %v58_v32 = vld [vmem:[%s2789_s0 + $0xf8] sm:$0xff]  ;;  %v88_v34 = vld [vmem:[%s2789_s0 + $0x1e8] sm:$0xff]  ;;  %v89_v38 = vld [vmem:[%s2789_s0 + $0x1f0] sm:$0xff] }
  0x19   :  { %1816 = vmatpush3.bf16.msra.mxu1 %v1966_v53  ;;  %v105_v36 = vpack.c.bf16 %v58_v32, %v57_v29  ;;  %v121_v39 = vpack.c.bf16 %v89_v38, %v89_v38  ;;  %v1970_v40 = vld [vmem:[%s2790_s3 + $0x38] sm:$0xff]   ;;  %v2267_v41 = vld [vmem:[%s2791_s2] ss:$0 sm:$0xff]  ;;  %v1972_v53 = vld [vmem:[%s2792_s5 + $0x8] sm:$0xff]  }
  0x1a   :  { %1754 = vmatmul.mubr.msk.bf16.gmra.mrb[8].mxu0 %vm145_vm0, %v95_v35  ;;  %1786 = vmatmul.mubr.msk.bf16.gmra.mrb[8].mxu1 %vm145_vm0, %v111_v49  ;;  %v119_v35 = vpack.c.bf16 %v86_v31, %v85_v30 }
  0x1b   :  { %1757 = vmatprep.mubr.msk.bf16.mxu0 %vm145_vm0, %v96_v37  ;;  %1789 = vmatprep.mubr.msk.bf16.mxu1 %vm145_vm0, %v112_v51  ;;  %v120_v37 = vpack.c.bf16 %v88_v34, %v87_v33  ;;  %v1971_v51 = vld [vmem:[%s2792_s5] sm:$0xff]  }
  0x1c   :  { %1817 = vmatprep.subr.bf16.mxu1 %v1967_v62  ;;  %1889 = vmatprep.subr.bf16.mxu0 %v1971_v51 }
  0x1d   :  { %1818 = vmatpush3.bf16.msra.mxu1 %v1967_v62  ;;  %1890 = vmatpush3.bf16.msra.mxu0 %v1971_v51 }
  0x1e   :  { %1819 = vmatprep.subr.bf16.mxu1 %v1968_v3  ;;  %1891 = vmatprep.subr.bf16.mxu0 %v1972_v53 }
  0x21   :  { %1820 = vmatpush3.bf16.msra.mxu1 %v1968_v3  ;;  %1892 = vmatpush3.bf16.msra.mxu0 %v1972_v53 }
  0x22   :  { %1758 = vmatmul.mubr.msk.bf16.gmra.mrb[12].mxu0 %vm145_vm0, %v97_v50  ;;  %1790 = vmatmul.mubr.msk.bf16.gmra.mrb[12].mxu1 %vm145_vm0, %v113_v63 }
  0x23   :  { %1761 = vmatprep.mubr.msk.bf16.mxu0 %vm145_vm0, %v98_v52  ;;  %1793 = vmatprep.mubr.msk.bf16.mxu1 %vm145_vm0, %v114_v1 }
  0x24   :  { %1821 = vmatprep.subr.bf16.mxu1 %v1969_v12 }
  0x25   :  { %1822 = vmatpush3.bf16.msra.mxu1 %v1969_v12 }
  0x26   :  { %1823 = vmatprep.subr.bf16.mxu1 %v1970_v40 }
  0x29   :  { %1824 = vmatpush3.bf16.msra.mxu1 %v1970_v40 }
  0x2a   :  { %1762 = vmatmul.mubr.msk.bf16.gmra.mrb[16].mxu0 %vm145_vm0, %v99_v0  ;;  %1794 = vmatmul.mubr.msk.bf16.gmra.mrb[16].mxu1 %vm145_vm0, %v115_v13 }
  0x2b   :  { %1765 = vmatprep.mubr.msk.bf16.mxu0 %vm145_vm0, %v100_v2  ;;  %1797 = vmatprep.mubr.msk.bf16.mxu1 %vm145_vm0, %v116_v15 }
  0x32   :  { %1766 = vmatmul.mubr.msk.bf16.gmra.mrb[20].mxu0 %vm145_vm0, %v101_v14  ;;  %1798 = vmatmul.mubr.msk.bf16.gmra.mrb[20].mxu1 %vm145_vm0, %v117_v25 }
  0x33   :  { %1769 = vmatprep.mubr.msk.bf16.mxu0 %vm145_vm0, %v102_v16  ;;  %1801 = vmatprep.mubr.msk.bf16.mxu1 %vm145_vm0, %v118_v27 }
  0x3a   :  { %1770 = vmatmul.mubr.msk.bf16.gmra.mrb[24].mxu0 %vm145_vm0, %v103_v26  ;;  %1802 = vmatmul.mubr.msk.bf16.gmra.mrb[24].mxu1 %vm145_vm0, %v119_v35 }
  0x3b   :  { %1773 = vmatprep.mubr.msk.bf16.mxu0 %vm145_vm0, %v104_v28  ;;  %1805 = vmatprep.mubr.msk.bf16.mxu1 %vm145_vm0, %v120_v37 }
  0x42   :  { %1774 = vmatmul.mubr.msk.bf16.gmra.mrb[28].mxu0 %vm145_vm0, %v105_v36  ;;  %1806 = vmatmul.mubr.msk.bf16.gmra.mrb[28].mxu1 %vm145_vm0, %v121_v39 }
  0xdd   :  { %v1747_v42 = vpop.f32.mrb[0].mxu0  ;;  %v1779_v57 = vpop.f32.mrb[0].mxu1 }
  0xde   :  { %v285_v43 = vadd.f32 %v1747_v42, %v2267_v41  ;;  %v276_v44 = vpop.f32.mrb[1].mxu0  ;;  %v413_v60 = vadd.f32 %v1779_v57, %v2267_v41  ;;  %v404_v61 = vpop.f32.mrb[1].mxu1 }
  0xdf   :  { %v277_v45 = vadd.f32 %v2267_v41, %v276_v44  ;;  %v1748_v46 = vpop.f32.mrb[2].mxu0  ;;  %v405_v0 = vadd.f32 %v2267_v41, %v404_v61  ;;  %v1780_v1 = vpop.f32.mrb[2].mxu1 }
  0xe0   :  { %v288_v47 = vadd.f32 %v1748_v46, %v2267_v41  ;;  %v279_v48 = vpop.f32.mrb[3].mxu0  ;;  %v532_v49 = vmax.f32 %v285_v43, 0.0  ;;  %v564_v4 = vmax.f32 %v413_v60, 0.0  ;;  %v416_v5 = vadd.f32 %v1780_v1, %v2267_v41  ;;  %v407_v6 = vpop.f32.mrb[3].mxu1 }
  0xe1   :  { %v280_v50 = vadd.f32 %v2267_v41, %v279_v48  ;;  %v530_v54 = vmax.f32 %v277_v45, 0.0  ;;  %v562_v9 = vmax.f32 %v405_v0, 0.0  ;;  %v408_v10 = vadd.f32 %v2267_v41, %v407_v6 }
  0xe2   :  { %v533_v52 = vmax.f32 %v288_v47, 0.0  ;;  %v565_v12 = vmax.f32 %v416_v5, 0.0 }
  0xe3   :  { %v531_v55 = vmax.f32 %v280_v50, 0.0  ;;  %v563_v15 = vmax.f32 %v408_v10, 0.0 }
  0xe4   :  { %v594_v56 = vpack.c.bf16 %v533_v52, %v532_v49  ;;  %v2287_v18 = vpack.c.bf16 %v565_v12, %v564_v4 }
  0xe5   :  { %v593_v58 = vpack.c.bf16 %v531_v55, %v530_v54  ;;  %v1751_v59 = vpop.f32.mrb[4].mxu0  ;;  %v2289_v20 = vpack.c.bf16 %v563_v15, %v562_v9  ;;  %v1783_v21 = vpop.f32.mrb[4].mxu1 }
  0xe6   :  { %v301_v62 = vadd.f32 %v1751_v59, %v2267_v41  ;;  %v292_v63 = vpop.f32.mrb[5].mxu0  ;;  %v429_v24 = vadd.f32 %v1783_v21, %v2267_v41  ;;  %v420_v25 = vpop.f32.mrb[5].mxu1 }
  0xe7   :  { %v293_v2 = vadd.f32 %v2267_v41, %v292_v63  ;;  %v1752_v3 = vpop.f32.mrb[6].mxu0  ;;  %1825 = vmatprep.mubr.bf16.mxu1 %v593_v58  ;;  %v421_v28 = vadd.f32 %v2267_v41, %v420_v25  ;;  %v1784_v29 = vpop.f32.mrb[6].mxu1 }
  0xe8   :  { %v304_v7 = vadd.f32 %v1752_v3, %v2267_v41  ;;  %v295_v8 = vpop.f32.mrb[7].mxu0  ;;  %1826 = vmatmul.mubr.bf16.vlgmr.msra.gmra.mrb[32].mxu1 %v594_v56  ;;  %v536_v13 = vmax.f32 %v301_v62, 0.0  ;;  %v568_v32 = vmax.f32 %v429_v24, 0.0  ;;  %v432_v33 = vadd.f32 %v1784_v29, %v2267_v41  ;;  %v423_v34 = vpop.f32.mrb[7].mxu1 }
  0xe9   :  { %v296_v11 = vadd.f32 %v2267_v41, %v295_v8  ;;  %v534_v16 = vmax.f32 %v293_v2, 0.0  ;;  %v566_v37 = vmax.f32 %v421_v28, 0.0  ;;  %v424_v38 = vadd.f32 %v2267_v41, %v423_v34 }
  0xea   :  { %v537_v14 = vmax.f32 %v304_v7, 0.0  ;;  %v569_v40 = vmax.f32 %v432_v33, 0.0 }
  0xeb   :  { %v535_v17 = vmax.f32 %v296_v11, 0.0  ;;  %v567_v44 = vmax.f32 %v424_v38, 0.0 }
  0xec   :  { %v596_v19 = vpack.c.bf16 %v537_v14, %v536_v13  ;;  %v2299_v47 = vpack.c.bf16 %v569_v40, %v568_v32 }
  0xed   :  { %v595_v22 = vpack.c.bf16 %v535_v17, %v534_v16  ;;  %v1755_v23 = vpop.f32.mrb[8].mxu0  ;;  %v2301_v49 = vpack.c.bf16 %v567_v44, %v566_v37  ;;  %v1787_v50 = vpop.f32.mrb[8].mxu1 }
  0xee   :  { %v317_v26 = vadd.f32 %v1755_v23, %v2267_v41  ;;  %v308_v27 = vpop.f32.mrb[9].mxu0  ;;  %v445_v53 = vadd.f32 %v1787_v50, %v2267_v41  ;;  %v436_v54 = vpop.f32.mrb[9].mxu1 }
  0xef   :  { %v309_v30 = vadd.f32 %v2267_v41, %v308_v27  ;;  %v1756_v31 = vpop.f32.mrb[10].mxu0  ;;  %1829 = vmatprep.mubr.bf16.mxu1 %v595_v22  ;;  %v437_v57 = vadd.f32 %v2267_v41, %v436_v54  ;;  %v1788_v58 = vpop.f32.mrb[10].mxu1 }
  0xf0   :  { %v320_v35 = vadd.f32 %v1756_v31, %v2267_v41  ;;  %v311_v36 = vpop.f32.mrb[11].mxu0  ;;  %1830 = vmatmul.mubr.bf16.gmra.mrb[36].mxu1 %v596_v19  ;;  %v540_v42 = vmax.f32 %v317_v26, 0.0  ;;  %v572_v61 = vmax.f32 %v445_v53, 0.0  ;;  %v448_v62 = vadd.f32 %v1788_v58, %v2267_v41  ;;  %v439_v63 = vpop.f32.mrb[11].mxu1 }
  0xf1   :  { %v312_v39 = vadd.f32 %v2267_v41, %v311_v36  ;;  %v538_v45 = vmax.f32 %v309_v30, 0.0  ;;  %v570_v2 = vmax.f32 %v437_v57, 0.0  ;;  %v440_v3 = vadd.f32 %v2267_v41, %v439_v63 }
  0xf2   :  { %v541_v43 = vmax.f32 %v320_v35, 0.0  ;;  %v573_v5 = vmax.f32 %v448_v62, 0.0 }
  0xf3   :  { %v539_v46 = vmax.f32 %v312_v39, 0.0  ;;  %v571_v8 = vmax.f32 %v440_v3, 0.0 }
  0xf4   :  { %v598_v48 = vpack.c.bf16 %v541_v43, %v540_v42  ;;  %v2311_v11 = vpack.c.bf16 %v573_v5, %v572_v61 }
  0xf5   :  { %v597_v51 = vpack.c.bf16 %v539_v46, %v538_v45  ;;  %v1759_v52 = vpop.f32.mrb[12].mxu0  ;;  %v2313_v13 = vpack.c.bf16 %v571_v8, %v570_v2  ;;  %v1791_v14 = vpop.f32.mrb[12].mxu1 }
  0xf6   :  { %v333_v55 = vadd.f32 %v1759_v52, %v2267_v41  ;;  %v324_v56 = vpop.f32.mrb[13].mxu0  ;;  %v461_v17 = vadd.f32 %v1791_v14, %v2267_v41  ;;  %v452_v19 = vpop.f32.mrb[13].mxu1 }
  0xf7   :  { %v325_v59 = vadd.f32 %v2267_v41, %v324_v56  ;;  %v1760_v60 = vpop.f32.mrb[14].mxu0  ;;  %1833 = vmatprep.mubr.bf16.mxu1 %v597_v51  ;;  %v453_v23 = vadd.f32 %v2267_v41, %v452_v19  ;;  %v1792_v24 = vpop.f32.mrb[14].mxu1 }
  0xf8   :  { %v336_v0 = vadd.f32 %v1760_v60, %v2267_v41  ;;  %v327_v1 = vpop.f32.mrb[15].mxu0  ;;  %1834 = vmatmul.mubr.bf16.gmra.mrb[40].mxu1 %v598_v48  ;;  %v544_v6 = vmax.f32 %v333_v55, 0.0  ;;  %v576_v27 = vmax.f32 %v461_v17, 0.0  ;;  %v464_v28 = vadd.f32 %v1792_v24, %v2267_v41  ;;  %v455_v29 = vpop.f32.mrb[15].mxu1 }
  0xf9   :  { %v328_v4 = vadd.f32 %v2267_v41, %v327_v1  ;;  %v542_v9 = vmax.f32 %v325_v59, 0.0  ;;  %v574_v32 = vmax.f32 %v453_v23, 0.0  ;;  %v456_v33 = vadd.f32 %v2267_v41, %v455_v29 }
  0xfa   :  { %v545_v7 = vmax.f32 %v336_v0, 0.0  ;;  %v577_v35 = vmax.f32 %v464_v28, 0.0 }
  0xfb   :  { %v543_v10 = vmax.f32 %v328_v4, 0.0  ;;  %v575_v38 = vmax.f32 %v456_v33, 0.0 }
  0xfc   :  { %v600_v12 = vpack.c.bf16 %v545_v7, %v544_v6  ;;  %v2323_v42 = vpack.c.bf16 %v577_v35, %v576_v27 }
  0xfd   :  { %v599_v15 = vpack.c.bf16 %v543_v10, %v542_v9  ;;  %v1763_v16 = vpop.f32.mrb[16].mxu0  ;;  %v2325_v44 = vpack.c.bf16 %v575_v38, %v574_v32  ;;  %v1795_v45 = vpop.f32.mrb[16].mxu1 }
  0xfe   :  { %v349_v21 = vadd.f32 %v1763_v16, %v2267_v41  ;;  %v340_v22 = vpop.f32.mrb[17].mxu0  ;;  %v477_v50 = vadd.f32 %v1795_v45, %v2267_v41  ;;  %v468_v51 = vpop.f32.mrb[17].mxu1 }
  0xff   :  { %v341_v25 = vadd.f32 %v2267_v41, %v340_v22  ;;  %v1764_v26 = vpop.f32.mrb[18].mxu0  ;;  %1837 = vmatprep.mubr.bf16.mxu1 %v599_v15  ;;  %v469_v54 = vadd.f32 %v2267_v41, %v468_v51  ;;  %v1796_v55 = vpop.f32.mrb[18].mxu1 }
 0x100   :  { %v352_v30 = vadd.f32 %v1764_v26, %v2267_v41  ;;  %v343_v31 = vpop.f32.mrb[19].mxu0  ;;  %1838 = vmatmul.mubr.bf16.gmra.mrb[44].mxu1 %v600_v12  ;;  %v548_v36 = vmax.f32 %v349_v21, 0.0  ;;  %v580_v58 = vmax.f32 %v477_v50, 0.0  ;;  %v480_v59 = vadd.f32 %v1796_v55, %v2267_v41  ;;  %v471_v60 = vpop.f32.mrb[19].mxu1 }
 0x101   :  { %v344_v34 = vadd.f32 %v2267_v41, %v343_v31  ;;  %v546_v39 = vmax.f32 %v341_v25, 0.0  ;;  %v578_v63 = vmax.f32 %v469_v54, 0.0  ;;  %v472_v0 = vadd.f32 %v2267_v41, %v471_v60 }
 0x102   :  { %v549_v37 = vmax.f32 %v352_v30, 0.0  ;;  %v581_v2 = vmax.f32 %v480_v59, 0.0 }
 0x103   :  { %v547_v40 = vmax.f32 %v344_v34, 0.0  ;;  %v579_v5 = vmax.f32 %v472_v0, 0.0 }
 0x104   :  { %v602_v43 = vpack.c.bf16 %v549_v37, %v548_v36  ;;  %v2335_v8 = vpack.c.bf16 %v581_v2, %v580_v58 }
 0x105   :  { %v601_v46 = vpack.c.bf16 %v547_v40, %v546_v39  ;;  %v1767_v48 = vpop.f32.mrb[20].mxu0  ;;  %v2337_v10 = vpack.c.bf16 %v579_v5, %v578_v63  ;;  %v1799_v12 = vpop.f32.mrb[20].mxu1 }
 0x106   :  { %v365_v52 = vadd.f32 %v1767_v48, %v2267_v41  ;;  %v356_v53 = vpop.f32.mrb[21].mxu0  ;;  %v493_v16 = vadd.f32 %v1799_v12, %v2267_v41  ;;  %v484_v17 = vpop.f32.mrb[21].mxu1 }
 0x107   :  { %v357_v56 = vadd.f32 %v2267_v41, %v356_v53  ;;  %v1768_v57 = vpop.f32.mrb[22].mxu0  ;;  %1841 = vmatprep.mubr.bf16.mxu1 %v601_v46  ;;  %v485_v22 = vadd.f32 %v2267_v41, %v484_v17  ;;  %v1800_v23 = vpop.f32.mrb[22].mxu1 }
 0x108   :  { %v368_v61 = vadd.f32 %v1768_v57, %v2267_v41  ;;  %v359_v62 = vpop.f32.mrb[23].mxu0  ;;  %1842 = vmatmul.mubr.bf16.gmra.mrb[48].mxu1 %v602_v43  ;;  %v552_v3 = vmax.f32 %v365_v52, 0.0  ;;  %v584_v26 = vmax.f32 %v493_v16, 0.0  ;;  %v496_v27 = vadd.f32 %v1800_v23, %v2267_v41  ;;  %v487_v28 = vpop.f32.mrb[23].mxu1 }
 0x109   :  { %v360_v1 = vadd.f32 %v2267_v41, %v359_v62  ;;  %v550_v6 = vmax.f32 %v357_v56, 0.0  ;;  %v582_v31 = vmax.f32 %v485_v22, 0.0  ;;  %v488_v32 = vadd.f32 %v2267_v41, %v487_v28 }
 0x10a   :  { %v553_v4 = vmax.f32 %v368_v61, 0.0  ;;  %v585_v34 = vmax.f32 %v496_v27, 0.0 }
 0x10b   :  { %v551_v7 = vmax.f32 %v360_v1, 0.0  ;;  %v583_v37 = vmax.f32 %v488_v32, 0.0 }
 0x10c   :  { %v604_v9 = vpack.c.bf16 %v553_v4, %v552_v3  ;;  %v620_v40 = vpack.c.bf16 %v585_v34, %v584_v26 }
 0x10d   :  { %v603_v14 = vpack.c.bf16 %v551_v7, %v550_v6  ;;  %v1771_v15 = vpop.f32.mrb[24].mxu0  ;;  %v619_v45 = vpack.c.bf16 %v583_v37, %v582_v31  ;;  %v1803_v46 = vpop.f32.mrb[24].mxu1 }
 0x10e   :  { %v381_v19 = vadd.f32 %v1771_v15, %v2267_v41  ;;  %v372_v21 = vpop.f32.mrb[25].mxu0  ;;  %v509_v51 = vadd.f32 %v1803_v46, %v2267_v41  ;;  %v500_v52 = vpop.f32.mrb[25].mxu1 }
 0x10f   :  { %v373_v24 = vadd.f32 %v2267_v41, %v372_v21  ;;  %v1772_v25 = vpop.f32.mrb[26].mxu0  ;;  %1845 = vmatprep.mubr.bf16.mxu1 %v603_v14  ;;  %v501_v55 = vadd.f32 %v2267_v41, %v500_v52  ;;  %v1804_v56 = vpop.f32.mrb[26].mxu1 }
 0x110   :  { %v384_v29 = vadd.f32 %v1772_v25, %v2267_v41  ;;  %v375_v30 = vpop.f32.mrb[27].mxu0  ;;  %1846 = vmatmul.mubr.bf16.gmra.mrb[52].mxu1 %v604_v9  ;;  %v556_v35 = vmax.f32 %v381_v19, 0.0  ;;  %v588_v59 = vmax.f32 %v509_v51, 0.0  ;;  %v512_v60 = vadd.f32 %v1804_v56, %v2267_v41  ;;  %v503_v61 = vpop.f32.mrb[27].mxu1 }
 0x111   :  { %v376_v33 = vadd.f32 %v2267_v41, %v375_v30  ;;  %v554_v38 = vmax.f32 %v373_v24, 0.0  ;;  %v586_v0 = vmax.f32 %v501_v55, 0.0  ;;  %v504_v1 = vadd.f32 %v2267_v41, %v503_v61 }
 0x112   :  { %v557_v36 = vmax.f32 %v384_v29, 0.0  ;;  %v589_v3 = vmax.f32 %v512_v60, 0.0 }
 0x113   :  { %v555_v39 = vmax.f32 %v376_v33, 0.0  ;;  %v587_v6 = vmax.f32 %v504_v1, 0.0 }
 0x114   :  { %v606_v43 = vpack.c.bf16 %v557_v36, %v556_v35  ;;  %v622_v12 = vpack.c.bf16 %v589_v3, %v588_v59 }
 0x115   :  { %v605_v48 = vpack.c.bf16 %v555_v39, %v554_v38  ;;  %v1775_v50 = vpop.f32.mrb[28].mxu0  ;;  %v621_v15 = vpack.c.bf16 %v587_v6, %v586_v0  ;;  %v1807_v16 = vpop.f32.mrb[28].mxu1 }
 0x116   :  { %v397_v53 = vadd.f32 %v1775_v50, %v2267_v41  ;;  %v388_v54 = vpop.f32.mrb[29].mxu0  ;;  %v516_v19 = vpop.f32.mrb[29].mxu1 }
 0x117   :  { %v389_v57 = vadd.f32 %v2267_v41, %v388_v54  ;;  %v1776_v58 = vpop.f32.mrb[30].mxu0  ;;  %1849 = vmatprep.mubr.bf16.mxu1 %v605_v48  ;;  %v517_v21 = vadd.f32 %v2267_v41, %v516_v19  ;;  %v1808_v22 = vpop.f32.mrb[30].mxu1 }
 0x118   :  { %v400_v62 = vadd.f32 %v1776_v58, %v2267_v41  ;;  %v391_v63 = vpop.f32.mrb[31].mxu0  ;;  %1850 = vmatmul.mubr.bf16.gmra.mrb[56].mxu1 %v606_v43  ;;  %v560_v4 = vmax.f32 %v397_v53, 0.0  ;;  %v519_v23 = vpop.f32.mrb[31].mxu1 }
 0x119   :  { %v392_v2 = vadd.f32 %v2267_v41, %v391_v63  ;;  %v558_v7 = vmax.f32 %v389_v57, 0.0  ;;  %v590_v24 = vmax.f32 %v517_v21, 0.0  ;;  %v520_v25 = vadd.f32 %v2267_v41, %v519_v23 }
 0x11a   :  { %v561_v5 = vmax.f32 %v400_v62, 0.0 }
 0x11b   :  { %v559_v9 = vmax.f32 %v392_v2, 0.0  ;;  %v591_v26 = vmax.f32 %v520_v25, 0.0 }
 0x11c   :  { %v608_v14 = vpack.c.bf16 %v561_v5, %v560_v4 }
 0x11d   :  { %v607_v17 = vpack.c.bf16 %v559_v9, %v558_v7  ;;  %v623_v27 = vpack.c.bf16 %v591_v26, %v590_v24 }
 0x11f   :  { %1853 = vmatprep.mubr.bf16.mxu1 %v607_v17 }
 0x120   :  { %1854 = vmatmul.mubr.bf16.gmra.mrb[60].mxu1 %v608_v14 }
 0x121   :  { %1857 = vmatprep.mubr.bf16.mxu1 %v2289_v20 }
 0x128   :  { %1858 = vmatmul.mubr.bf16.gmra.mrb[64].mxu1 %v2287_v18  ;;  %v525_v18 = vadd.f32 %v1807_v16, %v2267_v41 }
 0x129   :  { %1861 = vmatprep.mubr.bf16.mxu1 %v2301_v49  ;;  %v2371_v49 = vld [vmem:[%s2793_s4] ss:$0 sm:$0xff] }
 0x12a   :  { %v592_v20 = vmax.f32 %v525_v18, 0.0 }
 0x130   :  { %1862 = vmatmul.mubr.bf16.gmra.mrb[68].mxu1 %v2299_v47  ;;  %v624_v47 = vpack.c.bf16 %v592_v20, %v592_v20 }
 0x131   :  { %1865 = vmatprep.mubr.bf16.mxu1 %v2313_v13 }
 0x138   :  { %1866 = vmatmul.mubr.bf16.gmra.mrb[72].mxu1 %v2311_v11 }
 0x139   :  { %1869 = vmatprep.mubr.bf16.mxu1 %v2325_v44 }
 0x140   :  { %1870 = vmatmul.mubr.bf16.gmra.mrb[76].mxu1 %v2323_v42 }
 0x141   :  { %1873 = vmatprep.mubr.bf16.mxu1 %v2337_v10 }
 0x148   :  { %1874 = vmatmul.mubr.bf16.gmra.mrb[80].mxu1 %v2335_v8 }
 0x149   :  { %1877 = vmatprep.mubr.bf16.mxu1 %v619_v45 }
 0x150   :  { %1878 = vmatmul.mubr.bf16.gmra.mrb[84].mxu1 %v620_v40 }
 0x151   :  { %1881 = vmatprep.mubr.bf16.mxu1 %v621_v15 }
 0x158   :  { %1882 = vmatmul.mubr.bf16.gmra.mrb[88].mxu1 %v622_v12 }
 0x159   :  { %1885 = vmatprep.mubr.bf16.mxu1 %v623_v27 }
 0x160   :  { %1886 = vmatmul.mubr.bf16.gmra.mrb[92].mxu1 %v624_v47 }
 0x1bb   :  { %v1827_v11 = vpop.f32.mrb[32].mxu1 }
 0x1bc   :  { %v739_v13 = vadd.f32 %v1827_v11, %v2371_v49  ;;  %v730_v42 = vpop.f32.mrb[33].mxu1 }
 0x1bd   :  { %v731_v44 = vadd.f32 %v2371_v49, %v730_v42  ;;  %v1828_v8 = vpop.f32.mrb[34].mxu1 }
 0x1be   :  { %v742_v10 = vadd.f32 %v1828_v8, %v2371_v49  ;;  %v733_v41 = vpop.f32.mrb[35].mxu1  ;;  %v986_v29 = vmax.f32 %v739_v13, 0.0 }
 0x1bf   :  { %v734_v28 = vadd.f32 %v2371_v49, %v733_v41  ;;  %v984_v31 = vmax.f32 %v731_v44, 0.0 }
 0x1c0   :  { %v987_v30 = vmax.f32 %v742_v10, 0.0 }
 0x1c1   :  { %v985_v32 = vmax.f32 %v734_v28, 0.0 }
 0x1c2   :  { %v1048_v33 = vpack.c.bf16 %v987_v30, %v986_v29 }
 0x1c3   :  { %v1047_v34 = vpack.c.bf16 %v985_v32, %v984_v31  ;;  %v1831_v35 = vpop.f32.mrb[36].mxu1 }
 0x1c4   :  { %v755_v36 = vadd.f32 %v1831_v35, %v2371_v49  ;;  %v746_v37 = vpop.f32.mrb[37].mxu1 }
 0x1c5   :  { %v747_v38 = vadd.f32 %v2371_v49, %v746_v37  ;;  %v1832_v39 = vpop.f32.mrb[38].mxu1  ;;  %1893 = vmatprep.mubr.msk.bf16.mxu0 %vm145_vm0, %v1047_v34 }
 0x1c6   :  { %v758_v40 = vadd.f32 %v1832_v39, %v2371_v49  ;;  %v749_v43 = vpop.f32.mrb[39].mxu1  ;;  %1894 = vmatmul.mubr.msk.bf16.vlgmr.msra.gmra.mrb[32].mxu0 %vm145_vm0, %v1048_v33  ;;  %v990_v46 = vmax.f32 %v755_v36, 0.0 }
 0x1c7   :  { %v750_v45 = vadd.f32 %v2371_v49, %v749_v43  ;;  %v988_v50 = vmax.f32 %v747_v38, 0.0 }
 0x1c8   :  { %v991_v48 = vmax.f32 %v758_v40, 0.0 }
 0x1c9   :  { %v989_v51 = vmax.f32 %v750_v45, 0.0 }
 0x1ca   :  { %v1050_v52 = vpack.c.bf16 %v991_v48, %v990_v46 }
 0x1cb   :  { %v1049_v53 = vpack.c.bf16 %v989_v51, %v988_v50  ;;  %v1835_v54 = vpop.f32.mrb[40].mxu1 }
 0x1cc   :  { %v771_v55 = vadd.f32 %v1835_v54, %v2371_v49  ;;  %v762_v56 = vpop.f32.mrb[41].mxu1 }
 0x1cd   :  { %v763_v57 = vadd.f32 %v2371_v49, %v762_v56  ;;  %v1836_v58 = vpop.f32.mrb[42].mxu1  ;;  %1897 = vmatprep.mubr.msk.bf16.mxu0 %vm145_vm0, %v1049_v53 }
 0x1ce   :  { %v774_v59 = vadd.f32 %v1836_v58, %v2371_v49  ;;  %v765_v60 = vpop.f32.mrb[43].mxu1  ;;  %1898 = vmatmul.mubr.msk.bf16.gmra.mrb[36].mxu0 %vm145_vm0, %v1050_v52  ;;  %v994_v62 = vmax.f32 %v771_v55, 0.0 }
 0x1cf   :  { %v766_v61 = vadd.f32 %v2371_v49, %v765_v60  ;;  %v992_v0 = vmax.f32 %v763_v57, 0.0 }
 0x1d0   :  { %v995_v63 = vmax.f32 %v774_v59, 0.0 }
 0x1d1   :  { %v993_v1 = vmax.f32 %v766_v61, 0.0 }
 0x1d2   :  { %v1052_v2 = vpack.c.bf16 %v995_v63, %v994_v62 }
 0x1d3   :  { %v1051_v3 = vpack.c.bf16 %v993_v1, %v992_v0  ;;  %v1839_v4 = vpop.f32.mrb[44].mxu1 }
 0x1d4   :  { %v787_v5 = vadd.f32 %v1839_v4, %v2371_v49  ;;  %v778_v6 = vpop.f32.mrb[45].mxu1 }
 0x1d5   :  { %v779_v7 = vadd.f32 %v2371_v49, %v778_v6  ;;  %v1840_v9 = vpop.f32.mrb[46].mxu1  ;;  %1901 = vmatprep.mubr.msk.bf16.mxu0 %vm145_vm0, %v1051_v3 }
 0x1d6   :  { %v790_v12 = vadd.f32 %v1840_v9, %v2371_v49  ;;  %v781_v14 = vpop.f32.mrb[47].mxu1  ;;  %1902 = vmatmul.mubr.msk.bf16.gmra.mrb[40].mxu0 %vm145_vm0, %v1052_v2  ;;  %v998_v16 = vmax.f32 %v787_v5, 0.0 }
 0x1d7   :  { %v782_v15 = vadd.f32 %v2371_v49, %v781_v14  ;;  %v996_v19 = vmax.f32 %v779_v7, 0.0 }
 0x1d8   :  { %v999_v17 = vmax.f32 %v790_v12, 0.0 }
 0x1d9   :  { %v997_v21 = vmax.f32 %v782_v15, 0.0 }
 0x1da   :  { %v1054_v22 = vpack.c.bf16 %v999_v17, %v998_v16 }
 0x1db   :  { %v1053_v23 = vpack.c.bf16 %v997_v21, %v996_v19  ;;  %v1843_v24 = vpop.f32.mrb[48].mxu1 }
 0x1dc   :  { %v803_v25 = vadd.f32 %v1843_v24, %v2371_v49  ;;  %v794_v26 = vpop.f32.mrb[49].mxu1 }
 0x1dd   :  { %v795_v27 = vadd.f32 %v2371_v49, %v794_v26  ;;  %v1844_v18 = vpop.f32.mrb[50].mxu1  ;;  %1905 = vmatprep.mubr.msk.bf16.mxu0 %vm145_vm0, %v1053_v23 }
 0x1de   :  { %v806_v20 = vadd.f32 %v1844_v18, %v2371_v49  ;;  %v797_v47 = vpop.f32.mrb[51].mxu1  ;;  %1906 = vmatmul.mubr.msk.bf16.gmra.mrb[44].mxu0 %vm145_vm0, %v1054_v22  ;;  %v1002_v13 = vmax.f32 %v803_v25, 0.0 }
 0x1df   :  { %v798_v11 = vadd.f32 %v2371_v49, %v797_v47  ;;  %v1000_v44 = vmax.f32 %v795_v27, 0.0 }
 0x1e0   :  { %v1003_v42 = vmax.f32 %v806_v20, 0.0 }
 0x1e1   :  { %v1001_v8 = vmax.f32 %v798_v11, 0.0 }
 0x1e2   :  { %v1056_v10 = vpack.c.bf16 %v1003_v42, %v1002_v13 }
 0x1e3   :  { %v1055_v41 = vpack.c.bf16 %v1001_v8, %v1000_v44  ;;  %v1847_v28 = vpop.f32.mrb[52].mxu1 }
 0x1e4   :  { %v819_v29 = vadd.f32 %v1847_v28, %v2371_v49  ;;  %v810_v30 = vpop.f32.mrb[53].mxu1 }
 0x1e5   :  { %v811_v31 = vadd.f32 %v2371_v49, %v810_v30  ;;  %v1848_v32 = vpop.f32.mrb[54].mxu1  ;;  %1909 = vmatprep.mubr.msk.bf16.mxu0 %vm145_vm0, %v1055_v41 }
 0x1e6   :  { %v822_v33 = vadd.f32 %v1848_v32, %v2371_v49  ;;  %v813_v34 = vpop.f32.mrb[55].mxu1  ;;  %1910 = vmatmul.mubr.msk.bf16.gmra.mrb[48].mxu0 %vm145_vm0, %v1056_v10  ;;  %v1006_v36 = vmax.f32 %v819_v29, 0.0 }
 0x1e7   :  { %v814_v35 = vadd.f32 %v2371_v49, %v813_v34  ;;  %v1004_v38 = vmax.f32 %v811_v31, 0.0 }
 0x1e8   :  { %v1007_v37 = vmax.f32 %v822_v33, 0.0 }
 0x1e9   :  { %v1005_v39 = vmax.f32 %v814_v35, 0.0 }
 0x1ea   :  { %v1058_v40 = vpack.c.bf16 %v1007_v37, %v1006_v36 }
 0x1eb   :  { %v1057_v43 = vpack.c.bf16 %v1005_v39, %v1004_v38  ;;  %v1851_v45 = vpop.f32.mrb[56].mxu1 }
 0x1ec   :  { %v835_v46 = vadd.f32 %v1851_v45, %v2371_v49  ;;  %v826_v48 = vpop.f32.mrb[57].mxu1 }
 0x1ed   :  { %v827_v50 = vadd.f32 %v2371_v49, %v826_v48  ;;  %v1852_v51 = vpop.f32.mrb[58].mxu1  ;;  %1913 = vmatprep.mubr.msk.bf16.mxu0 %vm145_vm0, %v1057_v43 }
 0x1ee   :  { %v838_v52 = vadd.f32 %v1852_v51, %v2371_v49  ;;  %v829_v53 = vpop.f32.mrb[59].mxu1  ;;  %1914 = vmatmul.mubr.msk.bf16.gmra.mrb[52].mxu0 %vm145_vm0, %v1058_v40  ;;  %v1010_v55 = vmax.f32 %v835_v46, 0.0 }
 0x1ef   :  { %v830_v54 = vadd.f32 %v2371_v49, %v829_v53  ;;  %v1008_v57 = vmax.f32 %v827_v50, 0.0 }
 0x1f0   :  { %v1011_v56 = vmax.f32 %v838_v52, 0.0 }
 0x1f1   :  { %v1009_v58 = vmax.f32 %v830_v54, 0.0 }
 0x1f2   :  { %v1060_v59 = vpack.c.bf16 %v1011_v56, %v1010_v55 }
 0x1f3   :  { %v1059_v60 = vpack.c.bf16 %v1009_v58, %v1008_v57  ;;  %v1855_v61 = vpop.f32.mrb[60].mxu1 }
 0x1f4   :  { %v851_v62 = vadd.f32 %v1855_v61, %v2371_v49  ;;  %v842_v63 = vpop.f32.mrb[61].mxu1 }
 0x1f5   :  { %v843_v0 = vadd.f32 %v2371_v49, %v842_v63  ;;  %v1856_v1 = vpop.f32.mrb[62].mxu1  ;;  %1917 = vmatprep.mubr.msk.bf16.mxu0 %vm145_vm0, %v1059_v60 }
 0x1f6   :  { %v854_v2 = vadd.f32 %v1856_v1, %v2371_v49  ;;  %v845_v3 = vpop.f32.mrb[63].mxu1  ;;  %1918 = vmatmul.mubr.msk.bf16.gmra.mrb[56].mxu0 %vm145_vm0, %v1060_v59  ;;  %v1014_v5 = vmax.f32 %v851_v62, 0.0 }
 0x1f7   :  { %v846_v4 = vadd.f32 %v2371_v49, %v845_v3  ;;  %v1012_v7 = vmax.f32 %v843_v0, 0.0 }
 0x1f8   :  { %v1015_v6 = vmax.f32 %v854_v2, 0.0 }
 0x1f9   :  { %v1013_v9 = vmax.f32 %v846_v4, 0.0 }
 0x1fa   :  { %v1062_v12 = vpack.c.bf16 %v1015_v6, %v1014_v5 }
 0x1fb   :  { %v1061_v14 = vpack.c.bf16 %v1013_v9, %v1012_v7  ;;  %v1859_v15 = vpop.f32.mrb[64].mxu1 }
 0x1fc   :  { %v867_v16 = vadd.f32 %v1859_v15, %v2371_v49  ;;  %v858_v17 = vpop.f32.mrb[65].mxu1 }
 0x1fd   :  { %v859_v19 = vadd.f32 %v2371_v49, %v858_v17  ;;  %v1860_v21 = vpop.f32.mrb[66].mxu1  ;;  %1921 = vmatprep.mubr.msk.bf16.mxu0 %vm145_vm0, %v1061_v14 }
 0x1fe   :  { %v870_v22 = vadd.f32 %v1860_v21, %v2371_v49  ;;  %v861_v23 = vpop.f32.mrb[67].mxu1  ;;  %1922 = vmatmul.mubr.msk.bf16.gmra.mrb[60].mxu0 %vm145_vm0, %v1062_v12  ;;  %v1018_v25 = vmax.f32 %v867_v16, 0.0 }
 0x1ff   :  { %v862_v24 = vadd.f32 %v2371_v49, %v861_v23  ;;  %v1016_v27 = vmax.f32 %v859_v19, 0.0 }
 0x200   :  { %v1019_v26 = vmax.f32 %v870_v22, 0.0 }
 0x201   :  { %v1017_v18 = vmax.f32 %v862_v24, 0.0 }
 0x202   :  { %v1064_v20 = vpack.c.bf16 %v1019_v26, %v1018_v25 }
 0x203   :  { %v1063_v47 = vpack.c.bf16 %v1017_v18, %v1016_v27  ;;  %v1863_v11 = vpop.f32.mrb[68].mxu1 }
 0x204   :  { %v883_v13 = vadd.f32 %v1863_v11, %v2371_v49  ;;  %v874_v42 = vpop.f32.mrb[69].mxu1 }
 0x205   :  { %v875_v44 = vadd.f32 %v2371_v49, %v874_v42  ;;  %v1864_v8 = vpop.f32.mrb[70].mxu1  ;;  %1925 = vmatprep.mubr.msk.bf16.mxu0 %vm145_vm0, %v1063_v47 }
 0x206   :  { %v886_v10 = vadd.f32 %v1864_v8, %v2371_v49  ;;  %v877_v41 = vpop.f32.mrb[71].mxu1  ;;  %1926 = vmatmul.mubr.msk.bf16.gmra.mrb[64].mxu0 %vm145_vm0, %v1064_v20  ;;  %v1022_v29 = vmax.f32 %v883_v13, 0.0 }
 0x207   :  { %v878_v28 = vadd.f32 %v2371_v49, %v877_v41  ;;  %v1020_v31 = vmax.f32 %v875_v44, 0.0 }
 0x208   :  { %v1023_v30 = vmax.f32 %v886_v10, 0.0 }
 0x209   :  { %v1021_v32 = vmax.f32 %v878_v28, 0.0 }
 0x20a   :  { %v1066_v33 = vpack.c.bf16 %v1023_v30, %v1022_v29 }
 0x20b   :  { %v1065_v34 = vpack.c.bf16 %v1021_v32, %v1020_v31  ;;  %v1867_v35 = vpop.f32.mrb[72].mxu1 }
 0x20c   :  { %v899_v36 = vadd.f32 %v1867_v35, %v2371_v49  ;;  %v890_v37 = vpop.f32.mrb[73].mxu1 }
 0x20d   :  { %v891_v38 = vadd.f32 %v2371_v49, %v890_v37  ;;  %v1868_v39 = vpop.f32.mrb[74].mxu1  ;;  %1929 = vmatprep.mubr.msk.bf16.mxu0 %vm145_vm0, %v1065_v34 }
 0x20e   :  { %v902_v40 = vadd.f32 %v1868_v39, %v2371_v49  ;;  %v893_v43 = vpop.f32.mrb[75].mxu1  ;;  %1930 = vmatmul.mubr.msk.bf16.gmra.mrb[68].mxu0 %vm145_vm0, %v1066_v33  ;;  %v1026_v46 = vmax.f32 %v899_v36, 0.0 }
 0x20f   :  { %v894_v45 = vadd.f32 %v2371_v49, %v893_v43  ;;  %v1024_v50 = vmax.f32 %v891_v38, 0.0 }
 0x210   :  { %v1027_v48 = vmax.f32 %v902_v40, 0.0 }
 0x211   :  { %v1025_v51 = vmax.f32 %v894_v45, 0.0 }
 0x212   :  { %v1068_v52 = vpack.c.bf16 %v1027_v48, %v1026_v46 }
 0x213   :  { %v1067_v53 = vpack.c.bf16 %v1025_v51, %v1024_v50  ;;  %v1871_v54 = vpop.f32.mrb[76].mxu1 }
 0x214   :  { %v915_v55 = vadd.f32 %v1871_v54, %v2371_v49  ;;  %v906_v56 = vpop.f32.mrb[77].mxu1 }
 0x215   :  { %v907_v57 = vadd.f32 %v2371_v49, %v906_v56  ;;  %v1872_v58 = vpop.f32.mrb[78].mxu1  ;;  %1933 = vmatprep.mubr.msk.bf16.mxu0 %vm145_vm0, %v1067_v53 }
 0x216   :  { %v918_v59 = vadd.f32 %v1872_v58, %v2371_v49  ;;  %v909_v60 = vpop.f32.mrb[79].mxu1  ;;  %1934 = vmatmul.mubr.msk.bf16.gmra.mrb[72].mxu0 %vm145_vm0, %v1068_v52  ;;  %v1030_v62 = vmax.f32 %v915_v55, 0.0 }
 0x217   :  { %v910_v61 = vadd.f32 %v2371_v49, %v909_v60  ;;  %v1028_v0 = vmax.f32 %v907_v57, 0.0 }
 0x218   :  { %v1031_v63 = vmax.f32 %v918_v59, 0.0  ;;  %v2471_v59 = vld [vmem:[%s2794_s6] ss:$0 sm:$0xff] }
 0x219   :  { %v1029_v1 = vmax.f32 %v910_v61, 0.0 }
 0x21a   :  { %v1070_v2 = vpack.c.bf16 %v1031_v63, %v1030_v62 }
 0x21b   :  { %v1069_v3 = vpack.c.bf16 %v1029_v1, %v1028_v0  ;;  %v1875_v4 = vpop.f32.mrb[80].mxu1 }
 0x21c   :  { %v931_v5 = vadd.f32 %v1875_v4, %v2371_v49  ;;  %v922_v6 = vpop.f32.mrb[81].mxu1 }
 0x21d   :  { %v923_v7 = vadd.f32 %v2371_v49, %v922_v6  ;;  %v1876_v9 = vpop.f32.mrb[82].mxu1  ;;  %1937 = vmatprep.mubr.msk.bf16.mxu0 %vm145_vm0, %v1069_v3 }
 0x21e   :  { %v934_v12 = vadd.f32 %v1876_v9, %v2371_v49  ;;  %v925_v14 = vpop.f32.mrb[83].mxu1  ;;  %1938 = vmatmul.mubr.msk.bf16.gmra.mrb[76].mxu0 %vm145_vm0, %v1070_v2  ;;  %v1034_v16 = vmax.f32 %v931_v5, 0.0 }
 0x21f   :  { %v926_v15 = vadd.f32 %v2371_v49, %v925_v14  ;;  %v1032_v19 = vmax.f32 %v923_v7, 0.0 }
 0x220   :  { %v1035_v17 = vmax.f32 %v934_v12, 0.0 }
 0x221   :  { %v1033_v21 = vmax.f32 %v926_v15, 0.0 }
 0x222   :  { %v1072_v22 = vpack.c.bf16 %v1035_v17, %v1034_v16 }
 0x223   :  { %v1071_v23 = vpack.c.bf16 %v1033_v21, %v1032_v19  ;;  %v1879_v24 = vpop.f32.mrb[84].mxu1 }
 0x224   :  { %v947_v25 = vadd.f32 %v1879_v24, %v2371_v49  ;;  %v938_v26 = vpop.f32.mrb[85].mxu1 }
 0x225   :  { %v939_v27 = vadd.f32 %v2371_v49, %v938_v26  ;;  %v1880_v18 = vpop.f32.mrb[86].mxu1  ;;  %1941 = vmatprep.mubr.msk.bf16.mxu0 %vm145_vm0, %v1071_v23 }
 0x226   :  { %v950_v20 = vadd.f32 %v1880_v18, %v2371_v49  ;;  %v941_v47 = vpop.f32.mrb[87].mxu1  ;;  %1942 = vmatmul.mubr.msk.bf16.gmra.mrb[80].mxu0 %vm145_vm0, %v1072_v22  ;;  %v1038_v13 = vmax.f32 %v947_v25, 0.0 }
 0x227   :  { %v942_v11 = vadd.f32 %v2371_v49, %v941_v47  ;;  %v1036_v44 = vmax.f32 %v939_v27, 0.0 }
 0x228   :  { %v1039_v42 = vmax.f32 %v950_v20, 0.0 }
 0x229   :  { %v1037_v8 = vmax.f32 %v942_v11, 0.0 }
 0x22a   :  { %v1074_v10 = vpack.c.bf16 %v1039_v42, %v1038_v13 }
 0x22b   :  { %v1073_v41 = vpack.c.bf16 %v1037_v8, %v1036_v44  ;;  %v1883_v28 = vpop.f32.mrb[88].mxu1 }
 0x22c   :  { %v963_v29 = vadd.f32 %v1883_v28, %v2371_v49  ;;  %v954_v30 = vpop.f32.mrb[89].mxu1 }
 0x22d   :  { %v955_v31 = vadd.f32 %v2371_v49, %v954_v30  ;;  %v1884_v32 = vpop.f32.mrb[90].mxu1  ;;  %1945 = vmatprep.mubr.msk.bf16.mxu0 %vm145_vm0, %v1073_v41 }
 0x22e   :  { %v966_v33 = vadd.f32 %v1884_v32, %v2371_v49  ;;  %v957_v34 = vpop.f32.mrb[91].mxu1  ;;  %1946 = vmatmul.mubr.msk.bf16.gmra.mrb[84].mxu0 %vm145_vm0, %v1074_v10  ;;  %v1042_v36 = vmax.f32 %v963_v29, 0.0 }
 0x22f   :  { %v958_v35 = vadd.f32 %v2371_v49, %v957_v34  ;;  %v1040_v38 = vmax.f32 %v955_v31, 0.0 }
 0x230   :  { %v1043_v37 = vmax.f32 %v966_v33, 0.0 }
 0x231   :  { %v1041_v39 = vmax.f32 %v958_v35, 0.0 }
 0x232   :  { %v1076_v40 = vpack.c.bf16 %v1043_v37, %v1042_v36 }
 0x233   :  { %v1075_v43 = vpack.c.bf16 %v1041_v39, %v1040_v38  ;;  %v1887_v45 = vpop.f32.mrb[92].mxu1 }
 0x234   :  { %v979_v46 = vadd.f32 %v1887_v45, %v2371_v49  ;;  %v970_v48 = vpop.f32.mrb[93].mxu1 }
 0x235   :  { %v971_v50 = vadd.f32 %v2371_v49, %v970_v48  ;;  %v1888_v51 = vpop.f32.mrb[94].mxu1  ;;  %1949 = vmatprep.mubr.msk.bf16.mxu0 %vm145_vm0, %v1075_v43 }
 0x236   :  { %v973_v52 = vpop.f32.mrb[95].mxu1  ;;  %1950 = vmatmul.mubr.msk.bf16.gmra.mrb[88].mxu0 %vm145_vm0, %v1076_v40  ;;  %v1046_v54 = vmax.f32 %v979_v46, 0.0 }
 0x237   :  { %v974_v53 = vadd.f32 %v2371_v49, %v973_v52  ;;  %v1044_v55 = vmax.f32 %v971_v50, 0.0 }
 0x238   :  { %v1078_v58 = vpack.c.bf16 %v1046_v54, %v1046_v54 }
 0x239   :  { %v1045_v56 = vmax.f32 %v974_v53, 0.0 }
 0x23b   :  { %v1077_v57 = vpack.c.bf16 %v1045_v56, %v1044_v55 }
 0x23d   :  { %1953 = vmatprep.mubr.msk.bf16.mxu0 %vm145_vm0, %v1077_v57 }
 0x23e   :  { %1954 = vmatmul.mubr.msk.bf16.gmra.mrb[92].mxu0 %vm145_vm0, %v1078_v58 }
 0x299   :  { %v1895_v60 = vpop.f32.mrb[32].mxu0 }
 0x29a   :  { %v1241_v61 = vadd.f32 %v1895_v60, %v2471_v59  ;;  %v1232_v62 = vpop.f32.mrb[33].mxu0 }
 0x29b   :  { %v1233_v49 = vadd.f32 %v2471_v59, %v1232_v62  ;;  %v1896_v63 = vpop.f32.mrb[34].mxu0 }
 0x29c   :  { %1489 = vst.msk [vmem:[%s2795_s7 + $0x10] sm:$0xff] %vm1486_vm1, %v1241_v61  ;;  %v1244_v0 = vadd.f32 %v1896_v63, %v2471_v59  ;;  %v1235_v1 = vpop.f32.mrb[35].mxu0 }
 0x29d   :  { %1487 = vst.msk [vmem:[%s2795_s7] sm:$0xff] %vm1486_vm1, %v1233_v49  ;;  %v1236_v2 = vadd.f32 %v2471_v59, %v1235_v1 }
 0x29e   :  { %1490 = vst.msk [vmem:[%s2795_s7 + $0x18] sm:$0xff] %vm1486_vm1, %v1244_v0 }
 0x29f   :  { %1488 = vst.msk [vmem:[%s2795_s7 + $0x8] sm:$0xff] %vm1486_vm1, %v1236_v2 }
 0x2a1   :  { %v1899_v3 = vpop.f32.mrb[36].mxu0 }
 0x2a2   :  { %v1257_v4 = vadd.f32 %v1899_v3, %v2471_v59  ;;  %v1248_v5 = vpop.f32.mrb[37].mxu0 }
 0x2a3   :  { %v1249_v6 = vadd.f32 %v2471_v59, %v1248_v5  ;;  %v1900_v7 = vpop.f32.mrb[38].mxu0 }
 0x2a4   :  { %1493 = vst.msk [vmem:[%s2795_s7 + $0x30] sm:$0xff] %vm1486_vm1, %v1257_v4  ;;  %v1260_v9 = vadd.f32 %v1900_v7, %v2471_v59  ;;  %v1251_v12 = vpop.f32.mrb[39].mxu0 }
 0x2a5   :  { %1491 = vst.msk [vmem:[%s2795_s7 + $0x20] sm:$0xff] %vm1486_vm1, %v1249_v6  ;;  %v1252_v14 = vadd.f32 %v2471_v59, %v1251_v12 }
 0x2a6   :  { %1494 = vst.msk [vmem:[%s2795_s7 + $0x38] sm:$0xff] %vm1486_vm1, %v1260_v9 }
 0x2a7   :  { %1492 = vst.msk [vmem:[%s2795_s7 + $0x28] sm:$0xff] %vm1486_vm1, %v1252_v14 }
 0x2a9   :  { %v1903_v15 = vpop.f32.mrb[40].mxu0 }
 0x2aa   :  { %v1273_v16 = vadd.f32 %v1903_v15, %v2471_v59  ;;  %v1264_v17 = vpop.f32.mrb[41].mxu0 }
 0x2ab   :  { %v1265_v19 = vadd.f32 %v2471_v59, %v1264_v17  ;;  %v1904_v21 = vpop.f32.mrb[42].mxu0 }
 0x2ac   :  { %1497 = vst.msk [vmem:[%s2795_s7 + $0x50] sm:$0xff] %vm1486_vm1, %v1273_v16  ;;  %v1276_v22 = vadd.f32 %v1904_v21, %v2471_v59  ;;  %v1267_v23 = vpop.f32.mrb[43].mxu0 }
 0x2ad   :  { %1495 = vst.msk [vmem:[%s2795_s7 + $0x40] sm:$0xff] %vm1486_vm1, %v1265_v19  ;;  %v1268_v24 = vadd.f32 %v2471_v59, %v1267_v23 }
 0x2ae   :  { %1498 = vst.msk [vmem:[%s2795_s7 + $0x58] sm:$0xff] %vm1486_vm1, %v1276_v22 }
 0x2af   :  { %1496 = vst.msk [vmem:[%s2795_s7 + $0x48] sm:$0xff] %vm1486_vm1, %v1268_v24 }
 0x2b1   :  { %v1907_v25 = vpop.f32.mrb[44].mxu0 }
 0x2b2   :  { %v1289_v26 = vadd.f32 %v1907_v25, %v2471_v59  ;;  %v1280_v27 = vpop.f32.mrb[45].mxu0 }
 0x2b3   :  { %v1281_v18 = vadd.f32 %v2471_v59, %v1280_v27  ;;  %v1908_v20 = vpop.f32.mrb[46].mxu0 }
 0x2b4   :  { %1501 = vst.msk [vmem:[%s2795_s7 + $0x70] sm:$0xff] %vm1486_vm1, %v1289_v26  ;;  %v1292_v47 = vadd.f32 %v1908_v20, %v2471_v59  ;;  %v1283_v11 = vpop.f32.mrb[47].mxu0 }
 0x2b5   :  { %1499 = vst.msk [vmem:[%s2795_s7 + $0x60] sm:$0xff] %vm1486_vm1, %v1281_v18  ;;  %v1284_v13 = vadd.f32 %v2471_v59, %v1283_v11 }
 0x2b6   :  { %1502 = vst.msk [vmem:[%s2795_s7 + $0x78] sm:$0xff] %vm1486_vm1, %v1292_v47 }
 0x2b7   :  { %1500 = vst.msk [vmem:[%s2795_s7 + $0x68] sm:$0xff] %vm1486_vm1, %v1284_v13 }
 0x2b9   :  { %v1911_v42 = vpop.f32.mrb[48].mxu0 }
 0x2ba   :  { %v1305_v44 = vadd.f32 %v1911_v42, %v2471_v59  ;;  %v1296_v8 = vpop.f32.mrb[49].mxu0 }
 0x2bb   :  { %v1297_v10 = vadd.f32 %v2471_v59, %v1296_v8  ;;  %v1912_v41 = vpop.f32.mrb[50].mxu0 }
 0x2bc   :  { %1505 = vst.msk [vmem:[%s2795_s7 + $0x90] sm:$0xff] %vm1486_vm1, %v1305_v44  ;;  %v1308_v28 = vadd.f32 %v1912_v41, %v2471_v59  ;;  %v1299_v29 = vpop.f32.mrb[51].mxu0 }
 0x2bd   :  { %1503 = vst.msk [vmem:[%s2795_s7 + $0x80] sm:$0xff] %vm1486_vm1, %v1297_v10  ;;  %v1300_v30 = vadd.f32 %v2471_v59, %v1299_v29 }
 0x2be   :  { %1506 = vst.msk [vmem:[%s2795_s7 + $0x98] sm:$0xff] %vm1486_vm1, %v1308_v28 }
 0x2bf   :  { %1504 = vst.msk [vmem:[%s2795_s7 + $0x88] sm:$0xff] %vm1486_vm1, %v1300_v30 }
 0x2c1   :  { %v1915_v31 = vpop.f32.mrb[52].mxu0 }
 0x2c2   :  { %v1321_v32 = vadd.f32 %v1915_v31, %v2471_v59  ;;  %v1312_v33 = vpop.f32.mrb[53].mxu0 }
 0x2c3   :  { %v1313_v34 = vadd.f32 %v2471_v59, %v1312_v33  ;;  %v1916_v35 = vpop.f32.mrb[54].mxu0 }
 0x2c4   :  { %1509 = vst.msk [vmem:[%s2795_s7 + $0xb0] sm:$0xff] %vm1486_vm1, %v1321_v32  ;;  %v1324_v36 = vadd.f32 %v1916_v35, %v2471_v59  ;;  %v1315_v37 = vpop.f32.mrb[55].mxu0 }
 0x2c5   :  { %1507 = vst.msk [vmem:[%s2795_s7 + $0xa0] sm:$0xff] %vm1486_vm1, %v1313_v34  ;;  %v1316_v38 = vadd.f32 %v2471_v59, %v1315_v37 }
 0x2c6   :  { %1510 = vst.msk [vmem:[%s2795_s7 + $0xb8] sm:$0xff] %vm1486_vm1, %v1324_v36 }
 0x2c7   :  { %1508 = vst.msk [vmem:[%s2795_s7 + $0xa8] sm:$0xff] %vm1486_vm1, %v1316_v38 }
 0x2c9   :  { %v1919_v39 = vpop.f32.mrb[56].mxu0 }
 0x2ca   :  { %v1337_v40 = vadd.f32 %v1919_v39, %v2471_v59  ;;  %v1328_v43 = vpop.f32.mrb[57].mxu0 }
 0x2cb   :  { %v1329_v45 = vadd.f32 %v2471_v59, %v1328_v43  ;;  %v1920_v46 = vpop.f32.mrb[58].mxu0 }
 0x2cc   :  { %1513 = vst.msk [vmem:[%s2795_s7 + $0xd0] sm:$0xff] %vm1486_vm1, %v1337_v40  ;;  %v1340_v48 = vadd.f32 %v1920_v46, %v2471_v59  ;;  %v1331_v50 = vpop.f32.mrb[59].mxu0 }
 0x2cd   :  { %1511 = vst.msk [vmem:[%s2795_s7 + $0xc0] sm:$0xff] %vm1486_vm1, %v1329_v45  ;;  %v1332_v51 = vadd.f32 %v2471_v59, %v1331_v50 }
 0x2ce   :  { %1514 = vst.msk [vmem:[%s2795_s7 + $0xd8] sm:$0xff] %vm1486_vm1, %v1340_v48 }
 0x2cf   :  { %1512 = vst.msk [vmem:[%s2795_s7 + $0xc8] sm:$0xff] %vm1486_vm1, %v1332_v51 }
 0x2d1   :  { %v1923_v52 = vpop.f32.mrb[60].mxu0 }
 0x2d2   :  { %v1353_v53 = vadd.f32 %v1923_v52, %v2471_v59  ;;  %v1344_v54 = vpop.f32.mrb[61].mxu0 }
 0x2d3   :  { %v1345_v55 = vadd.f32 %v2471_v59, %v1344_v54  ;;  %v1924_v56 = vpop.f32.mrb[62].mxu0 }
 0x2d4   :  { %1517 = vst.msk [vmem:[%s2795_s7 + $0xf0] sm:$0xff] %vm1486_vm1, %v1353_v53  ;;  %v1356_v57 = vadd.f32 %v1924_v56, %v2471_v59  ;;  %v1347_v58 = vpop.f32.mrb[63].mxu0 }
 0x2d5   :  { %1515 = vst.msk [vmem:[%s2795_s7 + $0xe0] sm:$0xff] %vm1486_vm1, %v1345_v55  ;;  %v1348_v60 = vadd.f32 %v2471_v59, %v1347_v58 }
 0x2d6   :  { %1518 = vst.msk [vmem:[%s2795_s7 + $0xf8] sm:$0xff] %vm1486_vm1, %v1356_v57 }
 0x2d7   :  { %1516 = vst.msk [vmem:[%s2795_s7 + $0xe8] sm:$0xff] %vm1486_vm1, %v1348_v60 }
 0x2d9   :  { %v1927_v61 = vpop.f32.mrb[64].mxu0 }
 0x2da   :  { %v1369_v62 = vadd.f32 %v1927_v61, %v2471_v59  ;;  %v1360_v49 = vpop.f32.mrb[65].mxu0 }
 0x2db   :  { %v1361_v63 = vadd.f32 %v2471_v59, %v1360_v49  ;;  %v1928_v0 = vpop.f32.mrb[66].mxu0 }
 0x2dc   :  { %1521 = vst.msk [vmem:[%s2795_s7 + $0x110] sm:$0xff] %vm1486_vm1, %v1369_v62  ;;  %v1372_v1 = vadd.f32 %v1928_v0, %v2471_v59  ;;  %v1363_v2 = vpop.f32.mrb[67].mxu0 }
 0x2dd   :  { %1519 = vst.msk [vmem:[%s2795_s7 + $0x100] sm:$0xff] %vm1486_vm1, %v1361_v63  ;;  %v1364_v3 = vadd.f32 %v2471_v59, %v1363_v2 }
 0x2de   :  { %1522 = vst.msk [vmem:[%s2795_s7 + $0x118] sm:$0xff] %vm1486_vm1, %v1372_v1 }
 0x2df   :  { %1520 = vst.msk [vmem:[%s2795_s7 + $0x108] sm:$0xff] %vm1486_vm1, %v1364_v3 }
 0x2e1   :  { %v1931_v4 = vpop.f32.mrb[68].mxu0 }
 0x2e2   :  { %v1385_v5 = vadd.f32 %v1931_v4, %v2471_v59  ;;  %v1376_v6 = vpop.f32.mrb[69].mxu0 }
 0x2e3   :  { %v1377_v7 = vadd.f32 %v2471_v59, %v1376_v6  ;;  %v1932_v9 = vpop.f32.mrb[70].mxu0 }
 0x2e4   :  { %1525 = vst.msk [vmem:[%s2795_s7 + $0x130] sm:$0xff] %vm1486_vm1, %v1385_v5  ;;  %v1388_v12 = vadd.f32 %v1932_v9, %v2471_v59  ;;  %v1379_v14 = vpop.f32.mrb[71].mxu0 }
 0x2e5   :  { %1523 = vst.msk [vmem:[%s2795_s7 + $0x120] sm:$0xff] %vm1486_vm1, %v1377_v7  ;;  %v1380_v15 = vadd.f32 %v2471_v59, %v1379_v14 }
 0x2e6   :  { %1526 = vst.msk [vmem:[%s2795_s7 + $0x138] sm:$0xff] %vm1486_vm1, %v1388_v12 }
 0x2e7   :  { %1524 = vst.msk [vmem:[%s2795_s7 + $0x128] sm:$0xff] %vm1486_vm1, %v1380_v15 }
 0x2e9   :  { %v1935_v16 = vpop.f32.mrb[72].mxu0 }
 0x2ea   :  { %v1401_v17 = vadd.f32 %v1935_v16, %v2471_v59  ;;  %v1392_v19 = vpop.f32.mrb[73].mxu0 }
 0x2eb   :  { %v1393_v21 = vadd.f32 %v2471_v59, %v1392_v19  ;;  %v1936_v22 = vpop.f32.mrb[74].mxu0 }
 0x2ec   :  { %1529 = vst.msk [vmem:[%s2795_s7 + $0x150] sm:$0xff] %vm1486_vm1, %v1401_v17  ;;  %v1404_v23 = vadd.f32 %v1936_v22, %v2471_v59  ;;  %v1395_v24 = vpop.f32.mrb[75].mxu0 }
 0x2ed   :  { %1527 = vst.msk [vmem:[%s2795_s7 + $0x140] sm:$0xff] %vm1486_vm1, %v1393_v21  ;;  %v1396_v25 = vadd.f32 %v2471_v59, %v1395_v24 }
 0x2ee   :  { %1530 = vst.msk [vmem:[%s2795_s7 + $0x158] sm:$0xff] %vm1486_vm1, %v1404_v23 }
 0x2ef   :  { %1528 = vst.msk [vmem:[%s2795_s7 + $0x148] sm:$0xff] %vm1486_vm1, %v1396_v25 }
 0x2f1   :  { %v1939_v26 = vpop.f32.mrb[76].mxu0 }
 0x2f2   :  { %v1417_v27 = vadd.f32 %v1939_v26, %v2471_v59  ;;  %v1408_v18 = vpop.f32.mrb[77].mxu0 }
 0x2f3   :  { %v1409_v20 = vadd.f32 %v2471_v59, %v1408_v18  ;;  %v1940_v47 = vpop.f32.mrb[78].mxu0 }
 0x2f4   :  { %1533 = vst.msk [vmem:[%s2795_s7 + $0x170] sm:$0xff] %vm1486_vm1, %v1417_v27  ;;  %v1420_v11 = vadd.f32 %v1940_v47, %v2471_v59  ;;  %v1411_v13 = vpop.f32.mrb[79].mxu0 }
 0x2f5   :  { %1531 = vst.msk [vmem:[%s2795_s7 + $0x160] sm:$0xff] %vm1486_vm1, %v1409_v20  ;;  %v1412_v42 = vadd.f32 %v2471_v59, %v1411_v13 }
 0x2f6   :  { %1534 = vst.msk [vmem:[%s2795_s7 + $0x178] sm:$0xff] %vm1486_vm1, %v1420_v11 }
 0x2f7   :  { %1532 = vst.msk [vmem:[%s2795_s7 + $0x168] sm:$0xff] %vm1486_vm1, %v1412_v42 }
 0x2f9   :  { %v1943_v44 = vpop.f32.mrb[80].mxu0 }
 0x2fa   :  { %v1433_v8 = vadd.f32 %v1943_v44, %v2471_v59  ;;  %v1424_v10 = vpop.f32.mrb[81].mxu0 }
 0x2fb   :  { %v1425_v41 = vadd.f32 %v2471_v59, %v1424_v10  ;;  %v1944_v28 = vpop.f32.mrb[82].mxu0 }
 0x2fc   :  { %1537 = vst.msk [vmem:[%s2795_s7 + $0x190] sm:$0xff] %vm1486_vm1, %v1433_v8  ;;  %v1436_v29 = vadd.f32 %v1944_v28, %v2471_v59  ;;  %v1427_v30 = vpop.f32.mrb[83].mxu0 }
 0x2fd   :  { %1535 = vst.msk [vmem:[%s2795_s7 + $0x180] sm:$0xff] %vm1486_vm1, %v1425_v41  ;;  %v1428_v31 = vadd.f32 %v2471_v59, %v1427_v30 }
 0x2fe   :  { %1538 = vst.msk [vmem:[%s2795_s7 + $0x198] sm:$0xff] %vm1486_vm1, %v1436_v29 }
 0x2ff   :  { %1536 = vst.msk [vmem:[%s2795_s7 + $0x188] sm:$0xff] %vm1486_vm1, %v1428_v31 }
 0x301   :  { %v1947_v32 = vpop.f32.mrb[84].mxu0 }
 0x302   :  { %v1449_v33 = vadd.f32 %v1947_v32, %v2471_v59  ;;  %v1440_v34 = vpop.f32.mrb[85].mxu0 }
 0x303   :  { %v1441_v35 = vadd.f32 %v2471_v59, %v1440_v34  ;;  %v1948_v36 = vpop.f32.mrb[86].mxu0 }
 0x304   :  { %1541 = vst.msk [vmem:[%s2795_s7 + $0x1b0] sm:$0xff] %vm1486_vm1, %v1449_v33  ;;  %v1452_v37 = vadd.f32 %v1948_v36, %v2471_v59  ;;  %v1443_v38 = vpop.f32.mrb[87].mxu0 }
 0x305   :  { %1539 = vst.msk [vmem:[%s2795_s7 + $0x1a0] sm:$0xff] %vm1486_vm1, %v1441_v35  ;;  %v1444_v39 = vadd.f32 %v2471_v59, %v1443_v38 }
 0x306   :  { %1542 = vst.msk [vmem:[%s2795_s7 + $0x1b8] sm:$0xff] %vm1486_vm1, %v1452_v37 }
 0x307   :  { %1540 = vst.msk [vmem:[%s2795_s7 + $0x1a8] sm:$0xff] %vm1486_vm1, %v1444_v39 }
 0x309   :  { %v1951_v40 = vpop.f32.mrb[88].mxu0 }
 0x30a   :  { %v1465_v43 = vadd.f32 %v1951_v40, %v2471_v59  ;;  %v1456_v45 = vpop.f32.mrb[89].mxu0 }
 0x30b   :  { %v1457_v46 = vadd.f32 %v2471_v59, %v1456_v45  ;;  %v1952_v48 = vpop.f32.mrb[90].mxu0 }
 0x30c   :  { %1545 = vst.msk [vmem:[%s2795_s7 + $0x1d0] sm:$0xff] %vm1486_vm1, %v1465_v43  ;;  %v1468_v50 = vadd.f32 %v1952_v48, %v2471_v59  ;;  %v1459_v51 = vpop.f32.mrb[91].mxu0 }
 0x30d   :  { %1543 = vst.msk [vmem:[%s2795_s7 + $0x1c0] sm:$0xff] %vm1486_vm1, %v1457_v46  ;;  %v1460_v52 = vadd.f32 %v2471_v59, %v1459_v51 }
 0x30e   :  { %1546 = vst.msk [vmem:[%s2795_s7 + $0x1d8] sm:$0xff] %vm1486_vm1, %v1468_v50 }
 0x30f   :  { %1544 = vst.msk [vmem:[%s2795_s7 + $0x1c8] sm:$0xff] %vm1486_vm1, %v1460_v52 }
 0x311   :  { %v1955_v53 = vpop.f32.mrb[92].mxu0 }
 0x312   :  { %v1481_v54 = vadd.f32 %v1955_v53, %v2471_v59  ;;  %v1472_v55 = vpop.f32.mrb[93].mxu0 }
 0x313   :  { %v1473_v56 = vadd.f32 %v2471_v59, %v1472_v55  ;;  %v1956_v57 = vpop.f32.mrb[94].mxu0 }
 0x314   :  { %1549 = vst.msk [vmem:[%s2795_s7 + $0x1f0] sm:$0xff] %vm1486_vm1, %v1481_v54  ;;  %v1475_v58 = vpop.f32.mrb[95].mxu0 }
 0x315   :  { %1547 = vst.msk [vmem:[%s2795_s7 + $0x1e0] sm:$0xff] %vm1486_vm1, %v1473_v56  ;;  %v1476_v60 = vadd.f32 %v2471_v59, %v1475_v58 }
 0x317   :  { %1548 = vst.msk [vmem:[%s2795_s7 + $0x1e8] sm:$0xff] %vm1486_vm1, %v1476_v60 }

</bundles_post_ra>
